<compile_context>
chip_gen: v6e
topology: v6e:2x2x1
jax: 0.10.0
libtpu: 0.0.40
codegen_flags: <defaults>
</compile_context>

<pallas_src>
import functools

import jax
import jax.numpy as jnp
from jax import lax
from jax.experimental import pallas as pl
from jax.experimental.pallas import tpu as pltpu


# --------------------------------------------------------------------------------------
# Per-layer fused kernel (grid axis 0 = transformer layer)
# --------------------------------------------------------------------------------------

def _vit_layer_kernel(patches_ref, pos_bias_ref, head_mask_ref, proj_w_ref,
                      fc_w_ref, fc_b_ref,
                      in_w_ref, in_b_ref, out_w_ref, out_b_ref,
                      ln1_g_ref, ln1_b_ref,
                      ff1_w_ref, ff1_b_ref, ff2_w_ref, ff2_b_ref,
                      ln2_g_ref, ln2_b_ref,
                      out_ref, tok_ref, *,
                      nhead, batch, num_patches, d_model, ln_eps):
    f32 = jnp.float32
    bf16 = jnp.bfloat16
    B, P, E, H = batch, num_patches, d_model, nhead
    hd = E // H
    scale = 1.0 / float(hd) ** 0.5
    layer = pl.program_id(0)

    def layer_norm(y, g, b):
        mu = jnp.mean(y, axis=-1, keepdims=True)
        var = jnp.mean(jnp.square(y - mu), axis=-1, keepdims=True)
        return (y - mu) * lax.rsqrt(var + ln_eps) * g.astype(f32) + b.astype(f32)

    # ---- layer 0: patch projection + (conv bias + positional embedding) ----------------
    @pl.when(layer == 0)
    def _():
        tok0 = jnp.dot(patches_ref[...], proj_w_ref[...],
                       preferred_element_type=f32)
        tok_ref[...] = tok0 + pos_bias_ref[...]          # pos+bias pre-folded in wrapper

    tok = tok_ref[...]                                   # (T, E) f32, VMEM-resident

    # ---- QKV projection: one MXU matmul for all tokens --------------------------------
    qkv = jnp.dot(tok.astype(bf16), in_w_ref[...],
                  preferred_element_type=f32) + in_b_ref[...].astype(f32)
    q = qkv[:, 0:E]
    k = qkv[:, E:2 * E]
    v = qkv[:, 2 * E:3 * E]

    # ---- self-attention over the image-batch (sequence) axis, per patch & head --------
    # All (i, j) pair products stacked into ONE (B*B*P, E) bf16 matmul against the
    # block-diagonal head mask (per-head score reduction + lane broadcast in one shot).
    prod = jnp.concatenate(
        [q[i * P:(i + 1) * P, :] * k[j * P:(j + 1) * P, :]
         for i in range(B) for j in range(B)], axis=0)
    s_all = jnp.dot(prod.astype(bf16), head_mask_ref[...],
                    preferred_element_type=f32) * scale          # (B*B*P, E)

    attn_rows = []
    for i in range(B):
        s_j = [s_all[(i * B + j) * P:(i * B + j + 1) * P, :] for j in range(B)]
        m = s_j[0]
        for s in s_j[1:]:
            m = jnp.maximum(m, s)
        e_j = [jnp.exp(s - m) for s in s_j]
        denom = e_j[0]
        for e in e_j[1:]:
            denom = denom + e
        inv = pl.reciprocal(denom, approx=True)                  # EUP, off the VALU path
        acc = e_j[0] * inv * v[0:P, :]
        for j in range(1, B):
            acc = acc + e_j[j] * inv * v[j * P:(j + 1) * P, :]
        attn_rows.append(acc)
    attn = jnp.concatenate(attn_rows, axis=0)                    # (T, E)

    # ---- output projection + norm1(x + attn) -------------------------------------------
    attn = jnp.dot(attn.astype(bf16), out_w_ref[...],
                   preferred_element_type=f32) + out_b_ref[...].astype(f32)
    tok = layer_norm(tok + attn, ln1_g_ref[...], ln1_b_ref[...])

    # ---- feed-forward (single-shot matmuls, K=2048) + norm2(x + ff) --------------------
    h = jnp.dot(tok.astype(bf16), ff1_w_ref[...], preferred_element_type=f32)
    h = jnp.maximum(h + ff1_b_ref[...].astype(f32), 0.0)
    ffo = jnp.dot(h.astype(bf16), ff2_w_ref[...],
                  preferred_element_type=f32) + ff2_b_ref[...].astype(f32)
    tok = layer_norm(tok + ffo, ln2_g_ref[...], ln2_b_ref[...])

    tok_ref[...] = tok

    # ---- last layer: mean over patches (per image) + fc head ---------------------------
    @pl.when(layer == pl.num_programs(0) - 1)
    def _():
        means = [jnp.mean(tok[b * P:(b + 1) * P, :], axis=0, keepdims=True)
                 for b in range(B)]
        mean = jnp.concatenate(means, axis=0)                    # (B, E)
        out = jnp.dot(mean.astype(bf16), fc_w_ref[...],
                      preferred_element_type=f32) + fc_b_ref[...].astype(f32)
        out_ref[...] = out.astype(out_ref.dtype)                 # lane-dense (B, 128)


# --------------------------------------------------------------------------------------
# Wrapper: patch extraction (XLA glue) + single pallas_call with a layer grid
# --------------------------------------------------------------------------------------

def vit_encoder_forward(x, params):
    B, C, H, W = x.shape
    p = params["patch_size"]
    Hp, Wp = H // p, W // p
    P = Hp * Wp
    E = params["d_model"]
    nhead = params["nhead"]
    L = params["num_layers"]
    dff = params["ff1_w"].shape[-1]
    emb = params["fc_w"].shape[-1]
    hd = E // nhead
    T = B * P
    Cin = C * p * p

    # Conv2d(kernel=stride=patch) == im2col + matmul; flatten order (C, ph, pw) matches
    # the PyTorch conv weight layout (d_model, C, p, p).  Pre-cast to bf16 (MXU operand).
    patches = (x.reshape(B, C, Hp, p, Wp, p)
                 .transpose(0, 2, 4, 1, 3, 5)
                 .reshape(T, Cin)).astype(jnp.bfloat16)

    # Block-diagonal per-head mask (bf16) for the lane-dense score reduction/broadcast.
    head_ids = jnp.arange(E, dtype=jnp.int32) // hd
    head_mask = (head_ids[:, None] == head_ids[None, :]).astype(jnp.bfloat16)

    # Conv bias + positional embedding pre-folded into one (T, E) f32 slab.
    pos_bias = (params["proj_b"].astype(jnp.float32)
                + jnp.tile(params["pos"].astype(jnp.float32), (B, 1)))

    kernel = functools.partial(
        _vit_layer_kernel, nhead=nhead, batch=B, num_patches=P,
        d_model=E, ln_eps=1e-5)

    # Same-block-index specs: loaded once, stay VMEM-resident across the layer grid.
    def resident(shape):
        return pl.BlockSpec(shape, lambda l: (0,) * len(shape))

    # Per-layer specs: leading layer axis squeezed; Pallas double-buffers layer l+1
    # weights while layer l computes.
    def per_layer(shape):
        return pl.BlockSpec((None,) + shape, lambda l: (l,) + (0,) * len(shape))

    inputs = (patches, pos_bias, head_mask,
              params["proj_w"], params["fc_w"], params["fc_b"],
              params["in_w"], params["in_b"], params["out_w"], params["out_b"],
              params["ln1_g"], params["ln1_b"],
              params["ff1_w"], params["ff1_b"], params["ff2_w"], params["ff2_b"],
              params["ln2_g"], params["ln2_b"])

    flops = (2 * T * Cin * E
             + L * (2 * T * E * 3 * E            # QKV
                    + 2 * (B * B * P) * E * E    # fused score matmul
                    + 2 * T * E * E              # out proj
                    + 4 * T * E * dff)           # FFN
             + 2 * B * E * emb)
    transcendentals = L * (B * B * P * E + 4 * T + B * P * E) + 2 * B
    bytes_accessed = sum(int(a.size) * a.dtype.itemsize for a in inputs) + B * emb * 4

    return pl.pallas_call(
        kernel,
        out_shape=jax.ShapeDtypeStruct((B, emb), jnp.float32),
        grid_spec=pltpu.PrefetchScalarGridSpec(
            num_scalar_prefetch=0,
            grid=(L,),
            in_specs=[
                resident((T, Cin)),           # patches        (layer 0 only)
                resident((T, E)),             # pos_bias       (layer 0 only)
                resident((E, E)),             # head_mask
                resident((Cin, E)),           # proj_w         (layer 0 only)
                resident((E, emb)),           # fc_w           (last layer only)
                resident((1, emb)),           # fc_b
                per_layer((E, 3 * E)),        # in_w
                per_layer((1, 3 * E)),        # in_b
                per_layer((E, E)),            # out_w
                per_layer((1, E)),            # out_b
                per_layer((1, E)),            # ln1_g
                per_layer((1, E)),            # ln1_b
                per_layer((E, dff)),          # ff1_w
                per_layer((1, dff)),          # ff1_b
                per_layer((dff, E)),          # ff2_w
                per_layer((1, E)),            # ff2_b
                per_layer((1, E)),            # ln2_g
                per_layer((1, E)),            # ln2_b
            ],
            out_specs=pl.BlockSpec((B, emb), lambda l: (0, 0)),
            scratch_shapes=[pltpu.VMEM((T, E), jnp.float32)]),   # persistent tokens
        compiler_params=pltpu.CompilerParams(
            dimension_semantics=("arbitrary",),
            vmem_limit_bytes=8 * 1024 * 1024),
        cost_estimate=pl.CostEstimate(
            flops=flops, transcendentals=transcendentals,
            bytes_accessed=bytes_accessed),
    )(*inputs)


# --------------------------------------------------------------------------------------
# Deterministic synthetic parameters (shapes follow ViTEncoder.__init__)
# --------------------------------------------------------------------------------------

def init_params(key, model_type="basic", embedding_dim=128, input_shape=(3, 16, 16),
                patch_size=4):
    C, H, W = input_shape
    assert H % patch_size == 0 and W % patch_size == 0
    num_patches = (H // patch_size) * (W // patch_size)
    if model_type == "basic":
        d_model, num_layers = 64, 3
    elif model_type == "advanced":
        d_model, num_layers = 128, 6
    else:
        raise ValueError("Unsupported model_type for ViT")
    nhead, dff = 4, 2048   # nn.TransformerEncoderLayer: nhead=4 (arg), dim_feedforward=2048

    mm = jnp.bfloat16      # matmul-operand dtype (f32 accumulation inside the kernel)
    f32 = jnp.float32

    def nrm(k, shape, std=0.02, dtype=f32):
        return (std * jax.random.normal(k, shape)).astype(dtype)

    keys = iter(jax.random.split(key, 16))

    params = {
        "patch_size": patch_size,
        "d_model": d_model,
        "nhead": nhead,
        "num_layers": num_layers,
        # Conv2d weight (d_model, C, p, p) flattened to (C*p*p, d_model) for x @ w.
        "proj_w": nrm(next(keys), (C * patch_size * patch_size, d_model), dtype=mm),
        "proj_b": nrm(next(keys), (1, d_model)),
        "pos":    nrm(next(keys), (num_patches, d_model)),   # trunc_normal_(std=0.02) analogue
        "fc_w":   nrm(next(keys), (d_model, embedding_dim), dtype=mm),
        "fc_b":   nrm(next(keys), (1, embedding_dim)),
        # Per-layer weights stacked along a leading layer axis (blocked by the layer grid).
        "in_w":  nrm(next(keys), (num_layers, d_model, 3 * d_model), dtype=mm),  # in_proj_weight.T
        "in_b":  nrm(next(keys), (num_layers, 1, 3 * d_model)),
        "out_w": nrm(next(keys), (num_layers, d_model, d_model), dtype=mm),
        "out_b": nrm(next(keys), (num_layers, 1, d_model)),
        "ln1_g": jnp.ones((num_layers, 1, d_model), f32),
        "ln1_b": jnp.zeros((num_layers, 1, d_model), f32),
        "ff1_w": nrm(next(keys), (num_layers, d_model, dff), dtype=mm),
        "ff1_b": nrm(next(keys), (num_layers, 1, dff)),
        "ff2_w": nrm(next(keys), (num_layers, dff, d_model), dtype=mm),
        "ff2_b": nrm(next(keys), (num_layers, 1, d_model)),
        "ln2_g": jnp.ones((num_layers, 1, d_model), f32),
        "ln2_b": jnp.zeros((num_layers, 1, d_model), f32),
    }
    return params


# --------------------------------------------------------------------------------------

if __name__ == "__main__":
    key = jax.random.PRNGKey(0)
    k_param, k_x = jax.random.split(key)

    # basic ViT, 16x16 RGB images, 4x4 patches -> 16 patches, d_model=64, 3 layers.
    input_shape = (3, 16, 16)
    patch_size = 4
    B = 2

    params = init_params(k_param, model_type="basic", embedding_dim=128,
                         input_shape=input_shape, patch_size=patch_size)

    x = jax.random.normal(k_x, (B,) + input_shape, dtype=jnp.float32)   # NCHW like PyTorch

    out = vit_encoder_forward(x, params)
    out = jax.block_until_ready(out)

    assert out.shape == (B, 128), out.shape
    assert bool(jnp.all(jnp.isfinite(out)))
    print("KERNEL_OK")
</pallas_src>

<mosaic_0001>
module attributes {stable_mosaic.version = 11 : i64} {
  func.func @_vit_layer_kernel(%arg0: i32, %arg1: memref<32x48xbf16, #tpu.memory_space<vmem>>, %arg2: memref<32x64xf32, #tpu.memory_space<vmem>>, %arg3: memref<64x64xbf16, #tpu.memory_space<vmem>>, %arg4: memref<48x64xbf16, #tpu.memory_space<vmem>>, %arg5: memref<64x128xbf16, #tpu.memory_space<vmem>>, %arg6: memref<1x128xf32, #tpu.memory_space<vmem>>, %arg7: memref<1x64x192xbf16, #tpu.memory_space<vmem>>, %arg8: memref<1x1x192xf32, #tpu.memory_space<vmem>>, %arg9: memref<1x64x64xbf16, #tpu.memory_space<vmem>>, %arg10: memref<1x1x64xf32, #tpu.memory_space<vmem>>, %arg11: memref<1x1x64xf32, #tpu.memory_space<vmem>>, %arg12: memref<1x1x64xf32, #tpu.memory_space<vmem>>, %arg13: memref<1x64x2048xbf16, #tpu.memory_space<vmem>>, %arg14: memref<1x1x2048xf32, #tpu.memory_space<vmem>>, %arg15: memref<1x2048x64xbf16, #tpu.memory_space<vmem>>, %arg16: memref<1x1x64xf32, #tpu.memory_space<vmem>>, %arg17: memref<1x1x64xf32, #tpu.memory_space<vmem>>, %arg18: memref<1x1x64xf32, #tpu.memory_space<vmem>>, %arg19: memref<2x128xf32, #tpu.memory_space<vmem>>, %arg20: memref<32x64xf32, #tpu.memory_space<vmem>>) attributes {dimension_semantics = [#tpu.dimension_semantics<arbitrary>], iteration_bounds = array<i64: 3>, scalar_prefetch = 0 : i64, scratch_operands = 1 : i64, tpu.core_type = #tpu.core_type<tc>, window_params = [{pipeline_mode = #tpu.pipeline_mode<synchronous>, transform_indices = @transform_0, window_bounds = array<i64: 32, 48>}, {pipeline_mode = #tpu.pipeline_mode<synchronous>, transform_indices = @transform_1, window_bounds = array<i64: 32, 64>}, {pipeline_mode = #tpu.pipeline_mode<synchronous>, transform_indices = @transform_2, window_bounds = array<i64: 64, 64>}, {pipeline_mode = #tpu.pipeline_mode<synchronous>, transform_indices = @transform_3, window_bounds = array<i64: 48, 64>}, {pipeline_mode = #tpu.pipeline_mode<synchronous>, transform_indices = @transform_4, window_bounds = array<i64: 64, 128>}, {pipeline_mode = #tpu.pipeline_mode<synchronous>, transform_indices = @transform_5, window_bounds = array<i64: 1, 128>}, {transform_indices = @transform_6, window_bounds = array<i64: 1, 64, 192>}, {transform_indices = @transform_7, window_bounds = array<i64: 1, 1, 192>}, {transform_indices = @transform_8, window_bounds = array<i64: 1, 64, 64>}, {transform_indices = @transform_9, window_bounds = array<i64: 1, 1, 64>}, {transform_indices = @transform_10, window_bounds = array<i64: 1, 1, 64>}, {transform_indices = @transform_11, window_bounds = array<i64: 1, 1, 64>}, {transform_indices = @transform_12, window_bounds = array<i64: 1, 64, 2048>}, {transform_indices = @transform_13, window_bounds = array<i64: 1, 1, 2048>}, {transform_indices = @transform_14, window_bounds = array<i64: 1, 2048, 64>}, {transform_indices = @transform_15, window_bounds = array<i64: 1, 1, 64>}, {transform_indices = @transform_16, window_bounds = array<i64: 1, 1, 64>}, {transform_indices = @transform_17, window_bounds = array<i64: 1, 1, 64>}, {pipeline_mode = #tpu.pipeline_mode<synchronous>, transform_indices = @transform_18, window_bounds = array<i64: 2, 128>}]} {
    %c0_i32 = arith.constant 0 : i32
    %0 = arith.cmpi eq, %arg0, %c0_i32 : i32
    %1 = arith.extui %0 : i1 to i32
    %c0_i32_0 = arith.constant 0 : i32
    %2 = arith.cmpi ne, %1, %c0_i32_0 : i32
    scf.if %2 {
      %c0_59 = arith.constant 0 : index
      %c0_60 = arith.constant 0 : index
      %150 = vector.load %arg1[%c0_59, %c0_60] : memref<32x48xbf16, #tpu.memory_space<vmem>>, vector<32x48xbf16>
      %c0_61 = arith.constant 0 : index
      %c0_62 = arith.constant 0 : index
      %151 = vector.load %arg4[%c0_61, %c0_62] : memref<48x64xbf16, #tpu.memory_space<vmem>>, vector<48x64xbf16>
      %cst_63 = arith.constant dense<0.000000e+00> : vector<32x64xf32>
      %152 = tpu.matmul %150, %151, %cst_63 {dimension_numbers = #tpu.dot_dimension_numbers<[1], [0], [0], [1], [0, 0, 1, 1], [], []>} : vector<32x48xbf16>, vector<48x64xbf16>, vector<32x64xf32> -> vector<32x64xf32>
      %c0_64 = arith.constant 0 : index
      %c0_65 = arith.constant 0 : index
      %153 = vector.load %arg2[%c0_64, %c0_65] : memref<32x64xf32, #tpu.memory_space<vmem>>, vector<32x64xf32>
      %154 = arith.addf %152, %153 : vector<32x64xf32>
      %c0_66 = arith.constant 0 : index
      %c0_67 = arith.constant 0 : index
      %155 = vector.load %arg20[%c0_66, %c0_67] : memref<32x64xf32, #tpu.memory_space<vmem>>, vector<32x64xf32>
      tpu.vector_store %arg20[%c0_66, %c0_67], %154 {strides = array<i32>} : memref<32x64xf32, #tpu.memory_space<vmem>>, vector<32x64xf32>,
    } else {
    }
    %c0 = arith.constant 0 : index
    %c0_1 = arith.constant 0 : index
    %3 = vector.load %arg20[%c0, %c0_1] : memref<32x64xf32, #tpu.memory_space<vmem>>, vector<32x64xf32>
    %4 = arith.truncf %3 : vector<32x64xf32> to vector<32x64xbf16>
    %c0_2 = arith.constant 0 : index
    %c0_3 = arith.constant 0 : index
    %c0_4 = arith.constant 0 : index
    %5 = vector.load %arg7[%c0_2, %c0_3, %c0_4] : memref<1x64x192xbf16, #tpu.memory_space<vmem>>, vector<1x64x192xbf16>
    %6 = vector.shape_cast %5 : vector<1x64x192xbf16> to vector<64x192xbf16>
    %cst = arith.constant dense<0.000000e+00> : vector<32x192xf32>
    %7 = tpu.matmul %4, %6, %cst {dimension_numbers = #tpu.dot_dimension_numbers<[1], [0], [0], [1], [0, 0, 1, 1], [], []>} : vector<32x64xbf16>, vector<64x192xbf16>, vector<32x192xf32> -> vector<32x192xf32>
    %c0_5 = arith.constant 0 : index
    %c0_6 = arith.constant 0 : index
    %c0_7 = arith.constant 0 : index
    %8 = vector.load %arg8[%c0_5, %c0_6, %c0_7] : memref<1x1x192xf32, #tpu.memory_space<vmem>>, vector<1x1x192xf32>
    %9 = vector.shape_cast %8 : vector<1x1x192xf32> to vector<1x192xf32>
    %10 = vector.broadcast %9 : vector<1x192xf32> to vector<32x192xf32>
    %11 = arith.addf %7, %10 : vector<32x192xf32>
    %12 = vector.extract_strided_slice %11 {offsets = [0, 0], sizes = [32, 64], strides = [1, 1]} : vector<32x192xf32> to vector<32x64xf32>
    %13 = vector.extract_strided_slice %11 {offsets = [0, 64], sizes = [32, 64], strides = [1, 1]} : vector<32x192xf32> to vector<32x64xf32>
    %14 = vector.extract_strided_slice %11 {offsets = [0, 128], sizes = [32, 64], strides = [1, 1]} : vector<32x192xf32> to vector<32x64xf32>
    %15 = vector.extract_strided_slice %12 {offsets = [0, 0], sizes = [16, 64], strides = [1, 1]} : vector<32x64xf32> to vector<16x64xf32>
    %16 = vector.extract_strided_slice %13 {offsets = [0, 0], sizes = [16, 64], strides = [1, 1]} : vector<32x64xf32> to vector<16x64xf32>
    %17 = arith.mulf %15, %16 : vector<16x64xf32>
    %18 = vector.extract_strided_slice %12 {offsets = [0, 0], sizes = [16, 64], strides = [1, 1]} : vector<32x64xf32> to vector<16x64xf32>
    %19 = vector.extract_strided_slice %13 {offsets = [16, 0], sizes = [16, 64], strides = [1, 1]} : vector<32x64xf32> to vector<16x64xf32>
    %20 = arith.mulf %18, %19 : vector<16x64xf32>
    %21 = vector.extract_strided_slice %12 {offsets = [16, 0], sizes = [16, 64], strides = [1, 1]} : vector<32x64xf32> to vector<16x64xf32>
    %22 = vector.extract_strided_slice %13 {offsets = [0, 0], sizes = [16, 64], strides = [1, 1]} : vector<32x64xf32> to vector<16x64xf32>
    %23 = arith.mulf %21, %22 : vector<16x64xf32>
    %24 = vector.extract_strided_slice %12 {offsets = [16, 0], sizes = [16, 64], strides = [1, 1]} : vector<32x64xf32> to vector<16x64xf32>
    %25 = vector.extract_strided_slice %13 {offsets = [16, 0], sizes = [16, 64], strides = [1, 1]} : vector<32x64xf32> to vector<16x64xf32>
    %26 = arith.mulf %24, %25 : vector<16x64xf32>
    %27 = tpu.concatenate %17, %20, %23, %26 in 0 : vector<16x64xf32>, vector<16x64xf32>, vector<16x64xf32>, vector<16x64xf32> -> vector<64x64xf32>
    %28 = arith.truncf %27 : vector<64x64xf32> to vector<64x64xbf16>
    %c0_8 = arith.constant 0 : index
    %c0_9 = arith.constant 0 : index
    %29 = vector.load %arg3[%c0_8, %c0_9] : memref<64x64xbf16, #tpu.memory_space<vmem>>, vector<64x64xbf16>
    %cst_10 = arith.constant dense<0.000000e+00> : vector<64x64xf32>
    %30 = tpu.matmul %28, %29, %cst_10 {dimension_numbers = #tpu.dot_dimension_numbers<[1], [0], [0], [1], [0, 0, 1, 1], [], []>} : vector<64x64xbf16>, vector<64x64xbf16>, vector<64x64xf32> -> vector<64x64xf32>
    %cst_11 = arith.constant 2.500000e-01 : f32
    %31 = vector.broadcast %cst_11 : f32 to vector<64x64xf32>
    %32 = arith.mulf %30, %31 : vector<64x64xf32>
    %33 = vector.extract_strided_slice %32 {offsets = [0, 0], sizes = [16, 64], strides = [1, 1]} : vector<64x64xf32> to vector<16x64xf32>
    %34 = vector.extract_strided_slice %32 {offsets = [16, 0], sizes = [16, 64], strides = [1, 1]} : vector<64x64xf32> to vector<16x64xf32>
    %35 = arith.maximumf %33, %34 : vector<16x64xf32>
    %36 = arith.subf %33, %35 : vector<16x64xf32>
    %37 = math.exp %36 : vector<16x64xf32>
    %38 = arith.subf %34, %35 : vector<16x64xf32>
    %39 = math.exp %38 : vector<16x64xf32>
    %40 = arith.addf %37, %39 : vector<16x64xf32>
    %41 = tpu.reciprocal %40 {approx = true} : vector<16x64xf32> -> vector<16x64xf32>
    %42 = arith.mulf %37, %41 : vector<16x64xf32>
    %43 = vector.extract_strided_slice %14 {offsets = [0, 0], sizes = [16, 64], strides = [1, 1]} : vector<32x64xf32> to vector<16x64xf32>
    %44 = arith.mulf %42, %43 : vector<16x64xf32>
    %45 = arith.mulf %39, %41 : vector<16x64xf32>
    %46 = vector.extract_strided_slice %14 {offsets = [16, 0], sizes = [16, 64], strides = [1, 1]} : vector<32x64xf32> to vector<16x64xf32>
    %47 = arith.mulf %45, %46 : vector<16x64xf32>
    %48 = arith.addf %44, %47 : vector<16x64xf32>
    %49 = vector.extract_strided_slice %32 {offsets = [32, 0], sizes = [16, 64], strides = [1, 1]} : vector<64x64xf32> to vector<16x64xf32>
    %50 = vector.extract_strided_slice %32 {offsets = [48, 0], sizes = [16, 64], strides = [1, 1]} : vector<64x64xf32> to vector<16x64xf32>
    %51 = arith.maximumf %49, %50 : vector<16x64xf32>
    %52 = arith.subf %49, %51 : vector<16x64xf32>
    %53 = math.exp %52 : vector<16x64xf32>
    %54 = arith.subf %50, %51 : vector<16x64xf32>
    %55 = math.exp %54 : vector<16x64xf32>
    %56 = arith.addf %53, %55 : vector<16x64xf32>
    %57 = tpu.reciprocal %56 {approx = true} : vector<16x64xf32> -> vector<16x64xf32>
    %58 = arith.mulf %53, %57 : vector<16x64xf32>
    %59 = vector.extract_strided_slice %14 {offsets = [0, 0], sizes = [16, 64], strides = [1, 1]} : vector<32x64xf32> to vector<16x64xf32>
    %60 = arith.mulf %58, %59 : vector<16x64xf32>
    %61 = arith.mulf %55, %57 : vector<16x64xf32>
    %62 = vector.extract_strided_slice %14 {offsets = [16, 0], sizes = [16, 64], strides = [1, 1]} : vector<32x64xf32> to vector<16x64xf32>
    %63 = arith.mulf %61, %62 : vector<16x64xf32>
    %64 = arith.addf %60, %63 : vector<16x64xf32>
    %65 = tpu.concatenate %48, %64 in 0 : vector<16x64xf32>, vector<16x64xf32> -> vector<32x64xf32>
    %66 = arith.truncf %65 : vector<32x64xf32> to vector<32x64xbf16>
    %c0_12 = arith.constant 0 : index
    %c0_13 = arith.constant 0 : index
    %c0_14 = arith.constant 0 : index
    %67 = vector.load %arg9[%c0_12, %c0_13, %c0_14] : memref<1x64x64xbf16, #tpu.memory_space<vmem>>, vector<1x64x64xbf16>
    %68 = vector.shape_cast %67 : vector<1x64x64xbf16> to vector<64x64xbf16>
    %cst_15 = arith.constant dense<0.000000e+00> : vector<32x64xf32>
    %69 = tpu.matmul %66, %68, %cst_15 {dimension_numbers = #tpu.dot_dimension_numbers<[1], [0], [0], [1], [0, 0, 1, 1], [], []>} : vector<32x64xbf16>, vector<64x64xbf16>, vector<32x64xf32> -> vector<32x64xf32>
    %c0_16 = arith.constant 0 : index
    %c0_17 = arith.constant 0 : index
    %c0_18 = arith.constant 0 : index
    %70 = vector.load %arg10[%c0_16, %c0_17, %c0_18] : memref<1x1x64xf32, #tpu.memory_space<vmem>>, vector<1x1x64xf32>
    %71 = vector.shape_cast %70 : vector<1x1x64xf32> to vector<1x64xf32>
    %72 = vector.broadcast %71 : vector<1x64xf32> to vector<32x64xf32>
    %73 = arith.addf %69, %72 : vector<32x64xf32>
    %74 = arith.addf %3, %73 : vector<32x64xf32>
    %c0_19 = arith.constant 0 : index
    %c0_20 = arith.constant 0 : index
    %c0_21 = arith.constant 0 : index
    %75 = vector.load %arg11[%c0_19, %c0_20, %c0_21] : memref<1x1x64xf32, #tpu.memory_space<vmem>>, vector<1x1x64xf32>
    %76 = vector.shape_cast %75 : vector<1x1x64xf32> to vector<1x64xf32>
    %c0_22 = arith.constant 0 : index
    %c0_23 = arith.constant 0 : index
    %c0_24 = arith.constant 0 : index
    %77 = vector.load %arg12[%c0_22, %c0_23, %c0_24] : memref<1x1x64xf32, #tpu.memory_space<vmem>>, vector<1x1x64xf32>
    %78 = vector.shape_cast %77 : vector<1x1x64xf32> to vector<1x64xf32>
    %cst_25 = arith.constant dense<0.000000e+00> : vector<32xf32>
    %79 = vector.multi_reduction <add>, %74, %cst_25 [1] : vector<32x64xf32> to vector<32xf32>
    %80 = vector.shape_cast %79 : vector<32xf32> to vector<32x1xf32>
    %cst_26 = arith.constant 6.400000e+01 : f32
    %81 = vector.broadcast %cst_26 : f32 to vector<32x1xf32>
    %82 = arith.divf %80, %81 : vector<32x1xf32>
    %83 = vector.broadcast %82 : vector<32x1xf32> to vector<32x64xf32>
    %84 = arith.subf %74, %83 : vector<32x64xf32>
    %85 = arith.mulf %84, %84 : vector<32x64xf32>
    %cst_27 = arith.constant dense<0.000000e+00> : vector<32xf32>
    %86 = vector.multi_reduction <add>, %85, %cst_27 [1] : vector<32x64xf32> to vector<32xf32>
    %87 = vector.shape_cast %86 : vector<32xf32> to vector<32x1xf32>
    %cst_28 = arith.constant 6.400000e+01 : f32
    %88 = vector.broadcast %cst_28 : f32 to vector<32x1xf32>
    %89 = arith.divf %87, %88 : vector<32x1xf32>
    %90 = vector.broadcast %82 : vector<32x1xf32> to vector<32x64xf32>
    %91 = arith.subf %74, %90 : vector<32x64xf32>
    %cst_29 = arith.constant 9.99999974E-6 : f32
    %92 = vector.broadcast %cst_29 : f32 to vector<32x1xf32>
    %93 = arith.addf %89, %92 : vector<32x1xf32>
    %94 = math.rsqrt %93 : vector<32x1xf32>
    %95 = vector.broadcast %94 : vector<32x1xf32> to vector<32x64xf32>
    %96 = arith.mulf %91, %95 : vector<32x64xf32>
    %97 = vector.broadcast %76 : vector<1x64xf32> to vector<32x64xf32>
    %98 = arith.mulf %96, %97 : vector<32x64xf32>
    %99 = vector.broadcast %78 : vector<1x64xf32> to vector<32x64xf32>
    %100 = arith.addf %98, %99 : vector<32x64xf32>
    %101 = arith.truncf %100 : vector<32x64xf32> to vector<32x64xbf16>
    %c0_30 = arith.constant 0 : index
    %c0_31 = arith.constant 0 : index
    %c0_32 = arith.constant 0 : index
    %102 = vector.load %arg13[%c0_30, %c0_31, %c0_32] : memref<1x64x2048xbf16, #tpu.memory_space<vmem>>, vector<1x64x2048xbf16>
    %103 = vector.shape_cast %102 : vector<1x64x2048xbf16> to vector<64x2048xbf16>
    %cst_33 = arith.constant dense<0.000000e+00> : vector<32x2048xf32>
    %104 = tpu.matmul %101, %103, %cst_33 {dimension_numbers = #tpu.dot_dimension_numbers<[1], [0], [0], [1], [0, 0, 1, 1], [], []>} : vector<32x64xbf16>, vector<64x2048xbf16>, vector<32x2048xf32> -> vector<32x2048xf32>
    %c0_34 = arith.constant 0 : index
    %c0_35 = arith.constant 0 : index
    %c0_36 = arith.constant 0 : index
    %105 = vector.load %arg14[%c0_34, %c0_35, %c0_36] : memref<1x1x2048xf32, #tpu.memory_space<vmem>>, vector<1x1x2048xf32>
    %106 = vector.shape_cast %105 : vector<1x1x2048xf32> to vector<1x2048xf32>
    %107 = vector.broadcast %106 : vector<1x2048xf32> to vector<32x2048xf32>
    %108 = arith.addf %104, %107 : vector<32x2048xf32>
    %cst_37 = arith.constant 0.000000e+00 : f32
    %109 = vector.broadcast %cst_37 : f32 to vector<32x2048xf32>
    %110 = arith.maximumf %108, %109 : vector<32x2048xf32>
    %111 = arith.truncf %110 : vector<32x2048xf32> to vector<32x2048xbf16>
    %c0_38 = arith.constant 0 : index
    %c0_39 = arith.constant 0 : index
    %c0_40 = arith.constant 0 : index
    %112 = vector.load %arg15[%c0_38, %c0_39, %c0_40] : memref<1x2048x64xbf16, #tpu.memory_space<vmem>>, vector<1x2048x64xbf16>
    %113 = vector.shape_cast %112 : vector<1x2048x64xbf16> to vector<2048x64xbf16>
    %cst_41 = arith.constant dense<0.000000e+00> : vector<32x64xf32>
    %114 = tpu.matmul %111, %113, %cst_41 {dimension_numbers = #tpu.dot_dimension_numbers<[1], [0], [0], [1], [0, 0, 1, 1], [], []>} : vector<32x2048xbf16>, vector<2048x64xbf16>, vector<32x64xf32> -> vector<32x64xf32>
    %c0_42 = arith.constant 0 : index
    %c0_43 = arith.constant 0 : index
    %c0_44 = arith.constant 0 : index
    %115 = vector.load %arg16[%c0_42, %c0_43, %c0_44] : memref<1x1x64xf32, #tpu.memory_space<vmem>>, vector<1x1x64xf32>
    %116 = vector.shape_cast %115 : vector<1x1x64xf32> to vector<1x64xf32>
    %117 = vector.broadcast %116 : vector<1x64xf32> to vector<32x64xf32>
    %118 = arith.addf %114, %117 : vector<32x64xf32>
    %119 = arith.addf %100, %118 : vector<32x64xf32>
    %c0_45 = arith.constant 0 : index
    %c0_46 = arith.constant 0 : index
    %c0_47 = arith.constant 0 : index
    %120 = vector.load %arg17[%c0_45, %c0_46, %c0_47] : memref<1x1x64xf32, #tpu.memory_space<vmem>>, vector<1x1x64xf32>
    %121 = vector.shape_cast %120 : vector<1x1x64xf32> to vector<1x64xf32>
    %c0_48 = arith.constant 0 : index
    %c0_49 = arith.constant 0 : index
    %c0_50 = arith.constant 0 : index
    %122 = vector.load %arg18[%c0_48, %c0_49, %c0_50] : memref<1x1x64xf32, #tpu.memory_space<vmem>>, vector<1x1x64xf32>
    %123 = vector.shape_cast %122 : vector<1x1x64xf32> to vector<1x64xf32>
    %cst_51 = arith.constant dense<0.000000e+00> : vector<32xf32>
    %124 = vector.multi_reduction <add>, %119, %cst_51 [1] : vector<32x64xf32> to vector<32xf32>
    %125 = vector.shape_cast %124 : vector<32xf32> to vector<32x1xf32>
    %cst_52 = arith.constant 6.400000e+01 : f32
    %126 = vector.broadcast %cst_52 : f32 to vector<32x1xf32>
    %127 = arith.divf %125, %126 : vector<32x1xf32>
    %128 = vector.broadcast %127 : vector<32x1xf32> to vector<32x64xf32>
    %129 = arith.subf %119, %128 : vector<32x64xf32>
    %130 = arith.mulf %129, %129 : vector<32x64xf32>
    %cst_53 = arith.constant dense<0.000000e+00> : vector<32xf32>
    %131 = vector.multi_reduction <add>, %130, %cst_53 [1] : vector<32x64xf32> to vector<32xf32>
    %132 = vector.shape_cast %131 : vector<32xf32> to vector<32x1xf32>
    %cst_54 = arith.constant 6.400000e+01 : f32
    %133 = vector.broadcast %cst_54 : f32 to vector<32x1xf32>
    %134 = arith.divf %132, %133 : vector<32x1xf32>
    %135 = vector.broadcast %127 : vector<32x1xf32> to vector<32x64xf32>
    %136 = arith.subf %119, %135 : vector<32x64xf32>
    %cst_55 = arith.constant 9.99999974E-6 : f32
    %137 = vector.broadcast %cst_55 : f32 to vector<32x1xf32>
    %138 = arith.addf %134, %137 : vector<32x1xf32>
    %139 = math.rsqrt %138 : vector<32x1xf32>
    %140 = vector.broadcast %139 : vector<32x1xf32> to vector<32x64xf32>
    %141 = arith.mulf %136, %140 : vector<32x64xf32>
    %142 = vector.broadcast %121 : vector<1x64xf32> to vector<32x64xf32>
    %143 = arith.mulf %141, %142 : vector<32x64xf32>
    %144 = vector.broadcast %123 : vector<1x64xf32> to vector<32x64xf32>
    %145 = arith.addf %143, %144 : vector<32x64xf32>
    %c0_56 = arith.constant 0 : index
    %c0_57 = arith.constant 0 : index
    %146 = vector.load %arg20[%c0_56, %c0_57] : memref<32x64xf32, #tpu.memory_space<vmem>>, vector<32x64xf32>
    tpu.vector_store %arg20[%c0_56, %c0_57], %145 {strides = array<i32>} : memref<32x64xf32, #tpu.memory_space<vmem>>, vector<32x64xf32>,
    %c2_i32 = arith.constant 2 : i32
    %147 = arith.cmpi eq, %arg0, %c2_i32 : i32
    %148 = arith.extui %147 : i1 to i32
    %c0_i32_58 = arith.constant 0 : i32
    %149 = arith.cmpi ne, %148, %c0_i32_58 : i32
    scf.if %149 {
      %150 = vector.extract_strided_slice %145 {offsets = [0, 0], sizes = [16, 64], strides = [1, 1]} : vector<32x64xf32> to vector<16x64xf32>
      %cst_59 = arith.constant dense<0.000000e+00> : vector<64xf32>
      %151 = vector.multi_reduction <add>, %150, %cst_59 [0] : vector<16x64xf32> to vector<64xf32>
      %152 = vector.shape_cast %151 : vector<64xf32> to vector<1x64xf32>
      %cst_60 = arith.constant 1.600000e+01 : f32
      %153 = vector.broadcast %cst_60 : f32 to vector<1x64xf32>
      %154 = arith.divf %152, %153 : vector<1x64xf32>
      %155 = vector.extract_strided_slice %145 {offsets = [16, 0], sizes = [16, 64], strides = [1, 1]} : vector<32x64xf32> to vector<16x64xf32>
      %cst_61 = arith.constant dense<0.000000e+00> : vector<64xf32>
      %156 = vector.multi_reduction <add>, %155, %cst_61 [0] : vector<16x64xf32> to vector<64xf32>
      %157 = vector.shape_cast %156 : vector<64xf32> to vector<1x64xf32>
      %cst_62 = arith.constant 1.600000e+01 : f32
      %158 = vector.broadcast %cst_62 : f32 to vector<1x64xf32>
      %159 = arith.divf %157, %158 : vector<1x64xf32>
      %160 = tpu.concatenate %154, %159 in 0 : vector<1x64xf32>, vector<1x64xf32> -> vector<2x64xf32>
      %161 = arith.truncf %160 : vector<2x64xf32> to vector<2x64xbf16>
      %c0_63 = arith.constant 0 : index
      %c0_64 = arith.constant 0 : index
      %162 = vector.load %arg5[%c0_63, %c0_64] : memref<64x128xbf16, #tpu.memory_space<vmem>>, vector<64x128xbf16>
      %cst_65 = arith.constant dense<0.000000e+00> : vector<2x128xf32>
      %163 = tpu.matmul %161, %162, %cst_65 {dimension_numbers = #tpu.dot_dimension_numbers<[1], [0], [0], [1], [0, 0, 1, 1], [], []>} : vector<2x64xbf16>, vector<64x128xbf16>, vector<2x128xf32> -> vector<2x128xf32>
      %c0_66 = arith.constant 0 : index
      %c0_67 = arith.constant 0 : index
      %164 = vector.load %arg6[%c0_66, %c0_67] : memref<1x128xf32, #tpu.memory_space<vmem>>, vector<1x128xf32>
      %165 = vector.broadcast %164 : vector<1x128xf32> to vector<2x128xf32>
      %166 = arith.addf %163, %165 : vector<2x128xf32>
      %c0_68 = arith.constant 0 : index
      %c0_69 = arith.constant 0 : index
      %167 = vector.load %arg19[%c0_68, %c0_69] : memref<2x128xf32, #tpu.memory_space<vmem>>, vector<2x128xf32>
      tpu.vector_store %arg19[%c0_68, %c0_69], %166 {strides = array<i32>} : memref<2x128xf32, #tpu.memory_space<vmem>>, vector<2x128xf32>,
    } else {
    }
    return
  }
  func.func @transform_0(%arg0: i32) -> (i32, i32) {
    %c0_i32 = arith.constant 0 : i32
    %c0_i32_0 = arith.constant 0 : i32
    %c0_i32_1 = arith.constant 0 : i32
    return %c0_i32, %c0_i32_0 : i32, i32
  }
  func.func @transform_1(%arg0: i32) -> (i32, i32) {
    %c0_i32 = arith.constant 0 : i32
    %c0_i32_0 = arith.constant 0 : i32
    %c0_i32_1 = arith.constant 0 : i32
    return %c0_i32, %c0_i32_0 : i32, i32
  }
  func.func @transform_2(%arg0: i32) -> (i32, i32) {
    %c0_i32 = arith.constant 0 : i32
    %c0_i32_0 = arith.constant 0 : i32
    %c0_i32_1 = arith.constant 0 : i32
    return %c0_i32, %c0_i32_0 : i32, i32
  }
  func.func @transform_3(%arg0: i32) -> (i32, i32) {
    %c0_i32 = arith.constant 0 : i32
    %c0_i32_0 = arith.constant 0 : i32
    %c0_i32_1 = arith.constant 0 : i32
    return %c0_i32, %c0_i32_0 : i32, i32
  }
  func.func @transform_4(%arg0: i32) -> (i32, i32) {
    %c0_i32 = arith.constant 0 : i32
    %c0_i32_0 = arith.constant 0 : i32
    %c0_i32_1 = arith.constant 0 : i32
    return %c0_i32, %c0_i32_0 : i32, i32
  }
  func.func @transform_5(%arg0: i32) -> (i32, i32) {
    %c0_i32 = arith.constant 0 : i32
    %c0_i32_0 = arith.constant 0 : i32
    %c0_i32_1 = arith.constant 0 : i32
    return %c0_i32, %c0_i32_0 : i32, i32
  }
  func.func @transform_6(%arg0: i32) -> (i32, i32, i32) {
    %c0_i32 = arith.constant 0 : i32
    %c0_i32_0 = arith.constant 0 : i32
    %c0_i32_1 = arith.constant 0 : i32
    return %arg0, %c0_i32, %c0_i32_0 : i32, i32, i32
  }
  func.func @transform_7(%arg0: i32) -> (i32, i32, i32) {
    %c0_i32 = arith.constant 0 : i32
    %c0_i32_0 = arith.constant 0 : i32
    %c0_i32_1 = arith.constant 0 : i32
    return %arg0, %c0_i32, %c0_i32_0 : i32, i32, i32
  }
  func.func @transform_8(%arg0: i32) -> (i32, i32, i32) {
    %c0_i32 = arith.constant 0 : i32
    %c0_i32_0 = arith.constant 0 : i32
    %c0_i32_1 = arith.constant 0 : i32
    return %arg0, %c0_i32, %c0_i32_0 : i32, i32, i32
  }
  func.func @transform_9(%arg0: i32) -> (i32, i32, i32) {
    %c0_i32 = arith.constant 0 : i32
    %c0_i32_0 = arith.constant 0 : i32
    %c0_i32_1 = arith.constant 0 : i32
    return %arg0, %c0_i32, %c0_i32_0 : i32, i32, i32
  }
  func.func @transform_10(%arg0: i32) -> (i32, i32, i32) {
    %c0_i32 = arith.constant 0 : i32
    %c0_i32_0 = arith.constant 0 : i32
    %c0_i32_1 = arith.constant 0 : i32
    return %arg0, %c0_i32, %c0_i32_0 : i32, i32, i32
  }
  func.func @transform_11(%arg0: i32) -> (i32, i32, i32) {
    %c0_i32 = arith.constant 0 : i32
    %c0_i32_0 = arith.constant 0 : i32
    %c0_i32_1 = arith.constant 0 : i32
    return %arg0, %c0_i32, %c0_i32_0 : i32, i32, i32
  }
  func.func @transform_12(%arg0: i32) -> (i32, i32, i32) {
    %c0_i32 = arith.constant 0 : i32
    %c0_i32_0 = arith.constant 0 : i32
    %c0_i32_1 = arith.constant 0 : i32
    return %arg0, %c0_i32, %c0_i32_0 : i32, i32, i32
  }
  func.func @transform_13(%arg0: i32) -> (i32, i32, i32) {
    %c0_i32 = arith.constant 0 : i32
    %c0_i32_0 = arith.constant 0 : i32
    %c0_i32_1 = arith.constant 0 : i32
    return %arg0, %c0_i32, %c0_i32_0 : i32, i32, i32
  }
  func.func @transform_14(%arg0: i32) -> (i32, i32, i32) {
    %c0_i32 = arith.constant 0 : i32
    %c0_i32_0 = arith.constant 0 : i32
    %c0_i32_1 = arith.constant 0 : i32
    return %arg0, %c0_i32, %c0_i32_0 : i32, i32, i32
  }
  func.func @transform_15(%arg0: i32) -> (i32, i32, i32) {
    %c0_i32 = arith.constant 0 : i32
    %c0_i32_0 = arith.constant 0 : i32
    %c0_i32_1 = arith.constant 0 : i32
    return %arg0, %c0_i32, %c0_i32_0 : i32, i32, i32
  }
  func.func @transform_16(%arg0: i32) -> (i32, i32, i32) {
    %c0_i32 = arith.constant 0 : i32
    %c0_i32_0 = arith.constant 0 : i32
    %c0_i32_1 = arith.constant 0 : i32
    return %arg0, %c0_i32, %c0_i32_0 : i32, i32, i32
  }
  func.func @transform_17(%arg0: i32) -> (i32, i32, i32) {
    %c0_i32 = arith.constant 0 : i32
    %c0_i32_0 = arith.constant 0 : i32
    %c0_i32_1 = arith.constant 0 : i32
    return %arg0, %c0_i32, %c0_i32_0 : i32, i32, i32
  }
  func.func @transform_18(%arg0: i32) -> (i32, i32) {
    %c0_i32 = arith.constant 0 : i32
    %c0_i32_0 = arith.constant 0 : i32
    %c0_i32_1 = arith.constant 0 : i32
    return %c0_i32, %c0_i32_0 : i32, i32
  }
}

</mosaic_0001>

<bundles_post_ra>
// kernel: tpu_custom_call.1
= control target key start
LH: loop header
LB: loop body
LE: loop exit
PB: predicated region body
PF: predicated region fallthrough
CT: control target
= control target key end

     0   :  { %s5765_s0 = inlined_call_operand.vmem [shape: bf16[32,48], index: 0, kind: input, shape index: {}]   ;;  %s5766_s1 = inlined_call_operand.vmem [shape: f32[32,64], index: 1, kind: input, shape index: {}]   ;;  %s5767_s2 = inlined_call_operand.vmem [shape: bf16[64,64], index: 2, kind: input, shape index: {}]   ;;  %s5768_s3 = inlined_call_operand.vmem [shape: bf16[48,64], index: 3, kind: input, shape index: {}]   ;;  %s5769_s4 = inlined_call_operand.vmem [shape: bf16[64,128], index: 4, kind: input, shape index: {}]   ;;  %s5770_s5 = inlined_call_operand.vmem [shape: f32[1,128], index: 5, kind: input, shape index: {}]   ;;  %s5771_s6 = inlined_call_operand.vmem [shape: bf16[3,64,192], index: 6, kind: input, shape index: {}]   ;;  %s5772_s7 = inlined_call_operand.vmem [shape: f32[3,1,192], index: 7, kind: input, shape index: {}]   ;;  %s5773_s8 = inlined_call_operand.vmem [shape: bf16[3,64,64], index: 8, kind: input, shape index: {}]   ;;  %s5774_s9 = inlined_call_operand.vmem [shape: f32[3,1,64], index: 9, kind: input, shape index: {}]   ;;  %s5775_s10 = inlined_call_operand.vmem [shape: f32[3,1,64], index: 10, kind: input, shape index: {}]   ;;  %s5776_s11 = inlined_call_operand.vmem [shape: f32[3,1,64], index: 11, kind: input, shape index: {}]   ;;  %s5777_s12 = inlined_call_operand.vmem [shape: bf16[3,64,2048], index: 12, kind: input, shape index: {}]   ;;  %s5778_s13 = inlined_call_operand.vmem [shape: f32[3,1,2048], index: 13, kind: input, shape index: {}]   ;;  %s5779_s14 = inlined_call_operand.vmem [shape: bf16[3,2048,64], index: 14, kind: input, shape index: {}]   ;;  %s5780_s15 = inlined_call_operand.vmem [shape: f32[3,1,64], index: 15, kind: input, shape index: {}]   ;;  %s5781_s16 = inlined_call_operand.vmem [shape: f32[3,1,64], index: 16, kind: input, shape index: {}]   ;;  %s5782_s17 = inlined_call_operand.vmem [shape: f32[3,1,64], index: 17, kind: input, shape index: {}]   ;;  %s5783_s18 = inlined_call_operand.hbm [shape: f32[2,128], index: 18, kind: output, shape index: {}]  }
   0x1   :  { %5790 = sst [smem:[#allocation9_spill]] %s5765_s0 }
   0x2   :  { %5791 = sst [smem:[#allocation10_spill]] %s5766_s1 }
   0x3   :  { %5792 = sst [smem:[#allocation11_spill]] %s5767_s2 }
   0x4   :  { %5793 = sst [smem:[#allocation12_spill]] %s5769_s4 }
   0x5   :  { %5794 = sst [smem:[#allocation13_spill]] %s5770_s5 }
   0x6   :  { %5795 = sst [smem:[#allocation14_spill]] %s5771_s6 }
   0x7   :  { %5796 = sst [smem:[#allocation15_spill]] %s5772_s7 }
   0x8   :  { %5797 = sst [smem:[#allocation16_spill]] %s5773_s8 }
   0x9   :  { %5798 = sst [smem:[#allocation17_spill]] %s5783_s18 }
   0xa   :  { %23 = vsyncpa [#allocation4], 0  ;;  %s5047_s27 = smov 0  }
   0xb LB: > { %5799 = sst [smem:[#allocation6_spill]] %s4945_s27  ;;  %s5053_s28 = sadd.s32 4294967295, %s4945_s27   ;;  %s4945_s27 = sphi %s5047_s27, %s29_s27  }
   0xc   : > { %p4125_p0 = scmp.ge.s32.totalorder %s4945_s27, 1  ;;  %p604_p1 = scmp.lt.s32.totalorder %s4945_s27, 4 }
   0xe   : > { %p605_p2 = pnand %p4125_p0, %p604_p1 }
  0x10   : > { %608 = sbr.rel (%p605_p2) target bundleno = 2432 (0x980), region = 92 }
  0x15   : > { %p694_p3 = scmp.lt.s32.totalorder %s5053_s28, 2  ;;  %s5800_s6 = sld [smem:[#allocation14_spill]] }
  0x16   : > { %s5801_s7 = sld [smem:[#allocation15_spill]]  ;;  %p4136_p4 = scmp.ne.s32.totalorder %s5053_s28, 0 }
  0x17   : > { %s5059_s29 = scalar_select %p694_p3, %s5053_s28, 2 }
  0x18   : > { %s5803_s8 = sld [smem:[#allocation16_spill]] }
  0x19   : > { %s4393_s30 = sshll.u32 %s5059_s29, 6  ;;  %s4128_s0 = sshll.u32 %s5059_s29, 1 }
  0x1a   : > { %s4394_s23 = sshll.u32 %s5059_s29, 5  ;;  %s4133_s24 = sshll.u32 %s5059_s29, 4 }
  0x1b   : > { %s5066_s20 = scalar_lea.vmem %s5800_s6, %s4393_s30  ;;  %s5101_s18 = scalar_lea.vmem %s5778_s13, %s4133_s24 }
  0x1c   : > { %s5071_s2 = scalar_lea.vmem %s5801_s7, %s4128_s0  ;;  %s4395_s0 = sshll.u32 %s5059_s29, 9 }
  0x1d   : > { %5802 = sst [smem:[#allocation7_spill]] %s5071_s2  ;;  %s5095_s2 = scalar_lea.vmem %s5777_s12, %s4395_s0 }
  0x1e   : > { %s5081_s5 = scalar_lea.vmem %s5803_s8, %s4394_s23  ;;  %s4396_s27 = sshll.u32 %s5059_s29, 10 }
  0x1f   : > { %s5107_s19 = scalar_lea.vmem %s5779_s14, %s4396_s27  ;;  %s733_s21 = scalar_lea.vmem %s5780_s15, %s5059_s29 }
  0x20   : > { %s736_s0 = scalar_lea.vmem %s5781_s16, %s5059_s29  ;;  %s739_s26 = scalar_lea.vmem %s5782_s17, %s5059_s29 }
  0x21   : > { %744 = sbr.rel (%p4136_p4) target bundleno = 253 (0xfd), region = 96  ;;  %s5804_s6 = sld [smem:[#allocation9_spill]] (!%p4136_p4) }
  0x22   : > { %s5805_s27 = sld [smem:[#allocation10_spill]] (!%p4136_p4) }
  0x26   : > { %v4714_v0 = vld [vmem:[%s5768_s3 + $0x10] sm:$0xff]   ;;  %v4715_v1 = vld [vmem:[%s5768_s3 + $0x8] sm:$0xff]   ;;  %vm787_vm0 = vcmask 392192   ;;  %v4716_v3 = vld [vmem:[%s5768_s3] sm:$0xff]   ;;  %vm843_vm1 = vcmask 523264  }
  0x27   : > { %4645 = vmatprep.subr.bf16.mxu0 %v4714_v0  ;;  %v4717_v2 = vld [vmem:[%s5804_s6] sm:$0xff]   ;;  %v4718_v4 = vld [vmem:[%s5804_s6 + $0x8] sm:$0xff]  }
  0x28   : > { %4646 = vmatpush3.bf16.msra.mxu0 %v4714_v0  ;;  %4651 = vmatprep.mubr.msk.bf16.mxu0 %vm787_vm0, %v4717_v2  ;;  %s5806_s23 = smov %s5805_s27  ;;  %v757_v5 = vld [vmem:[%s5805_s27 + $0x10] sm:$0xff] }
  0x29   : > { %4647 = vmatprep.subr.bf16.mxu0 %v4715_v1  ;;  %v755_v7 = vld [vmem:[%s5806_s23] sm:$0xff]  ;;  %v758_v10 = vld [vmem:[%s5806_s23 + $0x18] sm:$0xff]  ;;  %v756_v13 = vld [vmem:[%s5806_s23 + $0x8] sm:$0xff] }
  0x2c   : > { %4648 = vmatpush3.bf16.msra.mxu0 %v4715_v1 }
  0x2d   : > { %4649 = vmatprep.subr.bf16.mxu0 %v4716_v3 }
  0x30   : > { %4650 = vmatpush3.bf16.msra.mxu0 %v4716_v3 }
  0x33   : > { %4652 = vmatmul.mubr.msk.bf16.vlgmr.msra.gmra.mxu0 %vm787_vm0, %v4718_v4 }
  0xf3   : > { %v4653_v6 = vpop.f32.mrf.mxu0 }
  0xf4   : > { %v837_v8 = vadd.f32 %v4653_v6, %v757_v5 }
  0xf5   : > { %v828_v9 = vpop.f32.mrf.mxu0 }
  0xf6   : > { %846 = vst.msk [vmem:[#allocation2 + $0x10] sm:$0xff] %vm843_vm1, %v837_v8  ;;  %v829_v11 = vadd.f32 %v828_v9, %v755_v7 }
  0xf7   : > { %v4654_v12 = vpop.f32.mrf.mxu0 }
  0xf8   : > { %844 = vst.msk [vmem:[#allocation2] sm:$0xff] %vm843_vm1, %v829_v11  ;;  %v840_v14 = vadd.f32 %v4654_v12, %v758_v10 }
  0xf9   : > { %v831_v15 = vpop.f32.mrf.mxu0 }
  0xfa   : > { %847 = vst.msk [vmem:[#allocation2 + $0x18] sm:$0xff] %vm843_vm1, %v840_v14  ;;  %v832_v16 = vadd.f32 %v831_v15, %v756_v13 }
  0xfc   : > { %845 = vst.msk [vmem:[#allocation2 + $0x8] sm:$0xff] %vm843_vm1, %v832_v16 }
  0xfd PF: > { %v4719_v17 = vld [vmem:[%s5066_s20 + $0x34] ss:$8 sps:$4 sm:$0xff]   ;;  %v4721_v18 = vld [vmem:[%s5066_s20 + $0x30] ss:$8 sps:$4 sm:$0xff]   ;;  %v4947_v19 = vmov 0   ;;  %vm914_vm2 = vcmask 523264   ;;  %v864_v32 = vlaneseq  ;;  %s5811_s1 = scalar_lea.vmem %s5775_s10, %s5059_s29 }
  0xfe   : > { %953 = vmatprep.mubr.bf16.mxu0 %v4947_v19  ;;  %929 = vmatprep.subr.bf16.mxu0 %v4719_v17  ;;  %v4722_v20 = vld [vmem:[%s5066_s20 + $0x24] ss:$8 sps:$4 sm:$0xff]   ;;  %v4724_v21 = vld [vmem:[%s5066_s20 + $0x20] ss:$8 sps:$4 sm:$0xff]   ;;  %v4725_v22 = vld [vmem:[%s5066_s20 + $0x14] ss:$8 sps:$4 sm:$0xff]  }
  0xff   : > { %930 = vmatpush1.bf16.msra.mxu0 %v4721_v18  ;;  %v4727_v23 = vld [vmem:[%s5066_s20 + $0x10] ss:$8 sps:$4 sm:$0xff]   ;;  %v4728_v24 = vld [vmem:[%s5066_s20 + $0x4] ss:$8 sps:$4 sm:$0xff]   ;;  %v4730_v25 = vld [vmem:[%s5066_s20] ss:$8 sps:$4 sm:$0xff]   ;;  %s5812_s20 = scalar_lea.vmem %s5776_s11, %s5059_s29 }
 0x100   : > { %931 = vmatprep.subr.bf16.mxu0 %v4722_v20  ;;  %v5158_v26 = vld [vmem:[#allocation2] sm:$0xff]  ;;  %s5807_s24 = sld [smem:[#allocation7_spill]]  ;;  %v5164_v29 = vld [vmem:[#allocation2 + $0x10] sm:$0xff]  ;;  %v5176_v34 = vshrl.u32 %v864_v32, 7  ;;  %v4735_v4 = vld [vmem:[%s5081_s5 + $0x18] sm:$0xff]   ;;  %p4382_p5 = scmp.ne.s32.totalorder %s5053_s28, 2 }
 0x101   : > { %v5166_v30 = vld [vmem:[#allocation2 + $0x18] sm:$0xff]  ;;  %s5808_s27 = sld [smem:[#allocation11_spill]]  ;;  %v4736_v5 = vld [vmem:[%s5081_s5 + $0x10] sm:$0xff]   ;;  %v4737_v6 = vld [vmem:[%s5081_s5 + $0x8] sm:$0xff]  }
 0x102   : > { %v853_v31 = vpack.c.bf16 %v5166_v30, %v5164_v29  ;;  %v5182_v36 = vsub.s32 0, %v5176_v34  ;;  %v4738_v7 = vld [vmem:[%s5081_s5] sm:$0xff]  }
 0x103   : > { %932 = vmatpush1.bf16.msra.mxu0 %v4724_v21  ;;  %v5160_v27 = vld [vmem:[#allocation2 + $0x8] sm:$0xff] }
 0x104   : > { %933 = vmatprep.subr.bf16.mxu0 %v4725_v22  ;;  %v852_v28 = vpack.c.bf16 %v5160_v27, %v5158_v26 }
 0x106   : > { %v5185_v37 = vld [vmem:[%s5807_s24] sm:$0x3]  ;;  %s4948_s24 = smov 64  }
 0x107   : > { %934 = vmatpush1.bf16.msra.mxu0 %v4727_v23  ;;  %s5809_s30 = smov %s5808_s27  ;;  %v4731_v33 = vld [vmem:[%s5808_s27 + $0x18] sm:$0xff]   ;;  %v867_v39 = vrot.slane %v5185_v37, %v5182_v36  ;;  %s5810_s27 = scalar_lea.vmem %s5774_s9, %s5059_s29 }
 0x108   : > { %935 = vmatprep.subr.bf16.mxu0 %v4728_v24  ;;  %4655 = vmatprep.subr.bf16.mxu1 %v4731_v33  ;;  %v4732_v35 = vld [vmem:[%s5809_s30 + $0x10] sm:$0xff]   ;;  %v4733_v38 = vld [vmem:[%s5809_s30 + $0x8] sm:$0xff]   ;;  %v4734_v41 = vld [vmem:[%s5809_s30] sm:$0xff]  }
 0x109   : > { %4656 = vmatpush3.bf16.msra.mxu1 %v4731_v33 }
 0x10a   : > { %4657 = vmatprep.subr.bf16.mxu1 %v4732_v35 }
 0x10b   : > { %936 = vmatpush1.bf16.msra.mxu0 %v4730_v25 }
 0x10c   : > { %4671 = vmatprep.subr.bf16.mxu0 %v4735_v4 }
 0x10d   : > { %4658 = vmatpush3.bf16.msra.mxu1 %v4732_v35 }
 0x10e   : > { %4152 = vmatmul.mubr.msk.bf16.vlgmr.msra.gmra.mxu0 %vm914_vm2, %v852_v28  ;;  %4659 = vmatprep.subr.bf16.mxu1 %v4733_v38 }
 0x10f   : > { %963 = vmatprep.mubr.bf16.mxu0 %v4947_v19  ;;  %4672 = vmatpush3.bf16.msra.mxu0 %v4735_v4 }
 0x110   : > { %4673 = vmatprep.subr.bf16.mxu0 %v4736_v5 }
 0x111   : > { %4660 = vmatpush3.bf16.msra.mxu1 %v4733_v38 }
 0x112   : > { %4661 = vmatprep.subr.bf16.mxu1 %v4734_v41 }
 0x113   : > { %4674 = vmatpush3.bf16.msra.mxu0 %v4736_v5 }
 0x114   : > { %4675 = vmatprep.subr.bf16.mxu0 %v4737_v6 }
 0x115   : > { %4662 = vmatpush3.bf16.msra.mxu1 %v4734_v41 }
 0x116   : > { %4153 = vmatmul.mubr.msk.bf16.gmra.mxu0 %vm914_vm2, %v853_v31 }
 0x117   : > { %4676 = vmatpush3.bf16.msra.mxu0 %v4737_v6 }
 0x118   : > { %4677 = vmatprep.subr.bf16.mxu0 %v4738_v7 }
 0x11b   : > { %4678 = vmatpush3.bf16.msra.mxu0 %v4738_v7 }
 0x1ce   : > { %v955_v40 = vpop.f32.mrf.mxu0 }
 0x1cf   : > { %v956_v42 = vadd.f32 %v955_v40, %v867_v39 }
 0x1d0   : > { %v5195_v43 = vpop.f32.mrf.mxu0 }
 0x1d1   : > { %976 = vrot.lane.b32.xlu0 %v956_v42, %s4948_s24 }
 0x1d2   : > { %v959_v44 = vpop.f32.mrf.mxu0 }
 0x1d3   : > { %v960_v45 = vadd.f32 %v959_v44, %v867_v39 }
 0x1d4   : > { %v5197_v46 = vpop.f32.mrf.mxu0 }
 0x1d5   : > { %978 = vrot.lane.b32.xlu0 %v960_v45, %s4948_s24 }
 0x1d6   : > { %v965_v47 = vpop.f32.mrf.mxu0 }
 0x1d7   : > { %v966_v48 = vadd.f32 %v965_v47, %v867_v39 }
 0x1d8   : > { %v5199_v49 = vpop.f32.mrf.mxu0 }
 0x1d9   : > { %986 = vrot.lane.b32.xlu1 %v966_v48, %s4948_s24 }
 0x1da   : > { %v969_v50 = vpop.f32.mrf.mxu0 }
 0x1db   : > { %v970_v51 = vadd.f32 %v969_v50, %v867_v39 }
 0x1dd   : > { %988 = vrot.lane.b32.xlu1 %v970_v51, %s4948_s24 }
 0x243   : > { %v977_v52 = vpop.permute.xlu0 %976 }
 0x244   : > { %v982_v54 = vmul.f32 %v977_v52, %v956_v42  ;;  %v994_v62 = vmul.f32 %v977_v52, %v966_v48 }
 0x247   : > { %v979_v53 = vpop.permute.xlu0 %978 }
 0x248   : > { %v983_v55 = vmul.f32 %v979_v53, %v960_v45  ;;  %v995_v58 = vmul.f32 %v979_v53, %v970_v51 }
 0x24a   : > { %v998_v56 = vpack.c.bf16 %v983_v55, %v982_v54  ;;  %v1000_v0 = vpack.c.bf16 %v995_v58, %v994_v62 }
 0x24b   : > { %v987_v57 = vpop.permute.xlu1 %986 }
 0x24c   : > { %4663 = vmatprep.mubr.msk.bf16.mxu1 %vm914_vm2, %v998_v56  ;;  %v992_v60 = vmul.f32 %v987_v57, %v956_v42  ;;  %v996_v2 = vmul.f32 %v987_v57, %v966_v48 }
 0x24f   : > { %v989_v59 = vpop.permute.xlu1 %988 }
 0x250   : > { %v993_v61 = vmul.f32 %v989_v59, %v960_v45  ;;  %v997_v1 = vmul.f32 %v989_v59, %v970_v51 }
 0x252   : > { %v999_v63 = vpack.c.bf16 %v993_v61, %v992_v60  ;;  %v1001_v3 = vpack.c.bf16 %v997_v1, %v996_v2 }
 0x254   : > { %4664 = vmatmul.mubr.msk.bf16.vlgmr.msra.gmra.mxu1 %vm914_vm2, %v999_v63  ;;  %v5211_v63 = vsub.s32 1, %v5176_v34 }
 0x255   : > { %4667 = vmatprep.mubr.msk.bf16.mxu1 %vm914_vm2, %v1000_v0 }
 0x25c   : > { %4668 = vmatmul.mubr.msk.bf16.gmra.mxu1 %vm914_vm2, %v1001_v3  ;;  %v871_v3 = vrot.slane %v5185_v37, %v5211_v63 }
 0x25d   : > { %1858 = vmatprep.mubr.bf16.mxu1 %v4947_v19 }
 0x25e   : > { %v958_v6 = vadd.f32 %v5195_v43, %v871_v3  ;;  %v968_v7 = vadd.f32 %v5199_v49, %v871_v3 }
 0x314   : > { %v4665_v8 = vpop.f32.mrf.mxu1 }
 0x315   : > { %v1113_v10 = vmul.f32 0.25, %v4665_v8 }
 0x316   : > { %v1080_v9 = vpop.f32.mrf.mxu1 }
 0x317   : > { %v1111_v11 = vmul.f32 0.25, %v1080_v9 }
 0x318   : > { %v4666_v12 = vpop.f32.mrf.mxu1 }
 0x319   : > { %v1119_v13 = vmax.f32 %v1111_v11, %v1113_v10  ;;  %v1114_v17 = vmul.f32 0.25, %v4666_v12 }
 0x31a   : > { %v1083_v14 = vpop.f32.mrf.mxu1 }
 0x31b   : > { %v1121_v15 = vsub.f32 %v1111_v11, %v1119_v13  ;;  %v1127_v16 = vsub.f32 %v1113_v10, %v1119_v13  ;;  %v1112_v18 = vmul.f32 0.25, %v1083_v14  ;;  %v971_v10 = vpop.f32.mrf.mxu0  ;;  %v962_v14 = vadd.f32 %v5197_v46, %v871_v3 }
 0x31c   : > { %v4669_v20 = vpop.f32.mrf.mxu1 }
 0x31d   : > { %v1123_v21 = vmul.f32 1.442695, %v1121_v15  ;;  %v1129_v22 = vmul.f32 1.442695, %v1127_v16  ;;  %v1120_v23 = vmax.f32 %v1112_v18, %v1114_v17  ;;  %v1117_v24 = vmul.f32 0.25, %v4669_v20 }
 0x31e   : > { %v1096_v25 = vpop.f32.mrf.mxu1  ;;  %v972_v15 = vadd.f32 %v971_v10, %v871_v3 }
 0x31f   : > { %4867 = vpow2.f32 %v1123_v21  ;;  %v1122_v28 = vsub.f32 %v1112_v18, %v1120_v23  ;;  %v1128_v31 = vsub.f32 %v1114_v17, %v1120_v23  ;;  %v1115_v32 = vmul.f32 0.25, %v1096_v25 }
 0x320   : > { %4869 = vpow2.f32 %v1129_v22  ;;  %v4670_v33 = vpop.f32.mrf.mxu1 }
 0x321   : > { %v1125_v35 = vmul.f32 1.442695, %v1122_v28  ;;  %v1131_v38 = vmul.f32 1.442695, %v1128_v31  ;;  %v1147_v39 = vmax.f32 %v1115_v32, %v1117_v24  ;;  %v1118_v40 = vmul.f32 0.25, %v4670_v33 }
 0x322   : > { %v1099_v41 = vpop.f32.mrf.mxu1 }
 0x323   : > { %4871 = vpow2.f32 %v1125_v35  ;;  %v1149_v42 = vsub.f32 %v1115_v32, %v1147_v39  ;;  %v1155_v44 = vsub.f32 %v1117_v24, %v1147_v39  ;;  %v1116_v45 = vmul.f32 0.25, %v1099_v41  ;;  %v4162_v41 = vld [vmem:[%s5810_s27] ss:$0 sm:$0xff] }
 0x324   : > { %4873 = vpow2.f32 %v1131_v38 }
 0x325   : > { %v1151_v47 = vmul.f32 1.442695, %v1149_v42  ;;  %v1157_v48 = vmul.f32 1.442695, %v1155_v44  ;;  %v1148_v50 = vmax.f32 %v1116_v45, %v1118_v40 }
 0x327   : > { %4875 = vpow2.f32 %v1151_v47  ;;  %v1150_v51 = vsub.f32 %v1116_v45, %v1148_v50  ;;  %v1156_v52 = vsub.f32 %v1118_v40, %v1148_v50 }
 0x328   : > { %4877 = vpow2.f32 %v1157_v48 }
 0x329   : > { %v1153_v53 = vmul.f32 1.442695, %v1150_v51  ;;  %v1159_v54 = vmul.f32 1.442695, %v1156_v52 }
 0x32b   : > { %4879 = vpow2.f32 %v1153_v53 }
 0x32c   : > { %v4868_v55 = vpop.eup %4867  ;;  %4881 = vpow2.f32 %v1159_v54 }
 0x32d   : > { %v4870_v56 = vpop.eup %4869 }
 0x32e   : > { %v1133_v57 = vadd.f32 %v4870_v56, %v4868_v55 }
 0x330   : > { %v4872_v58 = vpop.eup %4871  ;;  %4883 = vrcp.f32 %v1133_v57 }
 0x331   : > { %v4874_v59 = vpop.eup %4873 }
 0x332   : > { %v1134_v60 = vadd.f32 %v4874_v59, %v4872_v58 }
 0x334   : > { %v4876_v61 = vpop.eup %4875  ;;  %4885 = vrcp.f32 %v1134_v60 }
 0x335   : > { %v4878_v62 = vpop.eup %4877 }
 0x336   : > { %v1161_v0 = vadd.f32 %v4878_v62, %v4876_v61 }
 0x338   : > { %v4880_v1 = vpop.eup %4879  ;;  %4887 = vrcp.f32 %v1161_v0 }
 0x339   : > { %v4882_v2 = vpop.eup %4881 }
 0x33a   : > { %v1162_v4 = vadd.f32 %v4882_v2, %v4880_v1 }
 0x33c   : > { %4889 = vrcp.f32 %v1162_v4 }
 0x33d   : > { %v4884_v5 = vpop.eup %4883 }
 0x33e   : > { %v1137_v8 = vmul.f32 %v4884_v5, %v4868_v55  ;;  %v1141_v9 = vmul.f32 %v4884_v5, %v4870_v56 }
 0x340   : > { %v1139_v11 = vmul.f32 %v1137_v8, %v958_v6  ;;  %v1143_v12 = vmul.f32 %v1141_v9, %v968_v7 }
 0x341   : > { %v4886_v13 = vpop.eup %4885 }
 0x342   : > { %v1138_v16 = vmul.f32 %v4886_v13, %v4872_v58  ;;  %v1142_v17 = vmul.f32 %v4886_v13, %v4874_v59  ;;  %v1145_v18 = vadd.f32 %v1143_v12, %v1139_v11  ;;  %v1400_v13 = vld [vmem:[%s5095_s2 + $0x180] sm:$0xff] }
 0x344   : > { %v1140_v37 = vmul.f32 %v1138_v16, %v962_v14  ;;  %v1144_v20 = vmul.f32 %v1142_v17, %v972_v15  ;;  %v1409_v17 = vld [vmem:[%s5095_s2 + $0x1c8] sm:$0xff] }
 0x345   : > { %v4888_v21 = vpop.eup %4887 }
 0x346   : > { %v1165_v22 = vmul.f32 %v4888_v21, %v4876_v61  ;;  %v1169_v23 = vmul.f32 %v4888_v21, %v4878_v62  ;;  %v1146_v43 = vadd.f32 %v1144_v20, %v1140_v37  ;;  %v1384_v21 = vld [vmem:[%s5095_s2 + $0x100] sm:$0xff] }
 0x348   : > { %v1167_v49 = vmul.f32 %v1165_v22, %v958_v6  ;;  %v1175_v24 = vpack.c.bf16 %v1146_v43, %v1145_v18  ;;  %v1171_v25 = vmul.f32 %v1169_v23, %v968_v7  ;;  %v1392_v22 = vld [vmem:[%s5095_s2 + $0x140] sm:$0xff]  ;;  %v1385_v23 = vld [vmem:[%s5095_s2 + $0x108] sm:$0xff] }
 0x349   : > { %v4890_v28 = vpop.eup %4889  ;;  %v4204_v43 = vcombine.high %v1384_v21, %v1392_v22 }
 0x34a   : > { %v1166_v31 = vmul.f32 %v4890_v28, %v4880_v1  ;;  %v1170_v32 = vmul.f32 %v4890_v28, %v4882_v2  ;;  %4679 = vmatprep.mubr.msk.bf16.mxu0 %vm914_vm2, %v1175_v24  ;;  %v1173_v46 = vadd.f32 %v1171_v25, %v1167_v49  ;;  %v1393_v49 = vld [vmem:[%s5095_s2 + $0x148] sm:$0xff]  ;;  %v4203_v24 = vcombine.low %v1384_v21, %v1392_v22  ;;  %v1387_v21 = vld [vmem:[%s5095_s2 + $0x118] sm:$0xff] }
 0x34b   : > { %v4205_v25 = vcombine.low %v1385_v23, %v1393_v49  ;;  %v4206_v28 = vcombine.high %v1385_v23, %v1393_v49  ;;  %v1395_v22 = vld [vmem:[%s5095_s2 + $0x158] sm:$0xff] }
 0x34c   : > { %v1168_v33 = vmul.f32 %v1166_v31, %v962_v14  ;;  %v1172_v35 = vmul.f32 %v1170_v32, %v972_v15  ;;  %v1408_v14 = vld [vmem:[%s5095_s2 + $0x1c0] sm:$0xff]  ;;  %v1401_v15 = vld [vmem:[%s5095_s2 + $0x188] sm:$0xff] }
 0x34d   : > { %v4220_v16 = vcombine.high %v1400_v13, %v1408_v14  ;;  %v4219_v18 = vcombine.low %v1400_v13, %v1408_v14  ;;  %v4221_v37 = vcombine.low %v1401_v15, %v1409_v17  ;;  %v4222_v20 = vcombine.high %v1401_v15, %v1409_v17  ;;  %v1368_v31 = vld [vmem:[%s5095_s2 + $0x80] sm:$0xff] }
 0x34e   : > { %v1174_v38 = vadd.f32 %v1172_v35, %v1168_v33  ;;  %v1376_v32 = vld [vmem:[%s5095_s2 + $0xc0] sm:$0xff]  ;;  %v1377_v35 = vld [vmem:[%s5095_s2 + $0xc8] sm:$0xff] }
 0x34f   : > { %1834 = vmatprep.subr.bf16.mxu1 %v4220_v16  ;;  %1887 = vmatprep.subr.bf16.mxu0 %v4222_v20  ;;  %v4188_v33 = vcombine.high %v1368_v31, %v1376_v32  ;;  %v4170_v16 = vld [vmem:[%s5812_s20] ss:$0 sm:$0xff]  ;;  %v1394_v20 = vld [vmem:[%s5095_s2 + $0x150] sm:$0xff] }
 0x350   : > { %v1176_v39 = vpack.c.bf16 %v1174_v38, %v1173_v46  ;;  %1835 = vmatpush1.bf16.msra.mxu1 %v4219_v18  ;;  %v1369_v46 = vld [vmem:[%s5095_s2 + $0x88] sm:$0xff]  ;;  %v4187_v38 = vcombine.low %v1368_v31, %v1376_v32  ;;  %v1386_v18 = vld [vmem:[%s5095_s2 + $0x110] sm:$0xff] }
 0x351   : > { %1836 = vmatprep.subr.bf16.mxu1 %v4204_v43  ;;  %v1370_v31 = vld [vmem:[%s5095_s2 + $0x90] sm:$0xff] }
 0x352   : > { %4680 = vmatmul.mubr.msk.bf16.vlgmr.msra.gmra.mxu0 %vm914_vm2, %v1176_v39  ;;  %v4189_v39 = vcombine.low %v1369_v46, %v1377_v35  ;;  %v1378_v32 = vld [vmem:[%s5095_s2 + $0xd0] sm:$0xff] }
 0x353   : > { %1911 = vmatprep.mubr.bf16.mxu0 %v4947_v19  ;;  %1888 = vmatpush1.bf16.msra.mxu0 %v4221_v37 }
 0x354   : > { %1837 = vmatpush1.bf16.msra.mxu1 %v4203_v24  ;;  %1889 = vmatprep.subr.bf16.mxu0 %v4206_v28  ;;  %v4210_v28 = vcombine.high %v1387_v21, %v1395_v22 }
 0x355   : > { %1838 = vmatprep.subr.bf16.mxu1 %v4188_v33 }
 0x357   : > { %1890 = vmatpush1.bf16.msra.mxu0 %v4205_v25  ;;  %v4208_v25 = vcombine.high %v1386_v18, %v1394_v20 }
 0x358   : > { %1839 = vmatpush1.bf16.msra.mxu1 %v4187_v38 }
 0x412   : > { %v4681_v40 = vpop.f32.mrf.mxu0 }
 0x413   : > { %v1265_v44 = vadd.f32 %v4681_v40, %v4162_v41  ;;  %v4190_v40 = vcombine.high %v1369_v46, %v1377_v35  ;;  %v1379_v46 = vld [vmem:[%s5095_s2 + $0xd8] sm:$0xff]  ;;  %v4209_v35 = vcombine.low %v1387_v21, %v1395_v22  ;;  %v1406_v22 = vld [vmem:[%s5095_s2 + $0x1b0] sm:$0xff] }
 0x414   : > { %v1256_v42 = vpop.f32.mrf.mxu0 }
 0x415   : > { %v1257_v45 = vadd.f32 %v4162_v41, %v1256_v42  ;;  %v1273_v54 = vadd.f32 %v1265_v44, %v5164_v29  ;;  %1891 = vmatprep.subr.bf16.mxu0 %v4190_v40  ;;  %v1360_v42 = vld [vmem:[%s5095_s2 + $0x40] sm:$0xff]  ;;  %v1353_v44 = vld [vmem:[%s5095_s2 + $0x8] sm:$0xff] }
 0x416   : > { %v4682_v47 = vpop.f32.mrf.mxu0  ;;  %1892 = vmatpush1.bf16.msra.mxu0 %v4189_v39  ;;  %v4192_v39 = vcombine.high %v1370_v31, %v1378_v32 }
 0x417   : > { %v1271_v48 = vadd.f32 %v1257_v45, %v5158_v26  ;;  %v1268_v51 = vadd.f32 %v4682_v47, %v4162_v41  ;;  %v1283_v57 = vsel %vm914_vm2, %v1273_v54, 0.0  ;;  %v1361_v47 = vld [vmem:[%s5095_s2 + $0x48] sm:$0xff] }
 0x418   : > { %v1259_v50 = vpop.f32.mrf.mxu0 }
 0x419   : > { %v1260_v52 = vadd.f32 %v4162_v41, %v1259_v50  ;;  %v1277_v53 = vsel %vm914_vm2, %v1271_v48, 0.0  ;;  %v1274_v58 = vadd.f32 %v1268_v51, %v5166_v30  ;;  %v1352_v41 = vld [vmem:[%s5095_s2] sm:$0xff]  ;;  %v4173_v50 = vcombine.low %v1353_v44, %v1361_v47 }
 0x41a   : > { %1278 = vadd.xlane.f32.xlu0 %v1277_v53  ;;  %v4172_v45 = vcombine.high %v1352_v41, %v1360_v42  ;;  %v4174_v51 = vcombine.high %v1353_v44, %v1361_v47  ;;  %v1410_v53 = vld [vmem:[%s5095_s2 + $0x1d0] sm:$0xff]  ;;  %v1355_v44 = vld [vmem:[%s5095_s2 + $0x18] sm:$0xff] }
 0x41b   : > { %v1272_v55 = vadd.f32 %v1260_v52, %v5160_v27  ;;  %v1286_v26 = vsel %vm914_vm2, %v1274_v58, 0.0  ;;  %v1402_v52 = vld [vmem:[%s5095_s2 + $0x190] sm:$0xff] }
 0x41c   : > { %1840 = vmatprep.subr.bf16.mxu1 %v4172_v45  ;;  %1893 = vmatprep.subr.bf16.mxu0 %v4174_v51  ;;  %v1363_v45 = vld [vmem:[%s5095_s2 + $0x58] sm:$0xff] }
 0x41d   : > { %v1280_v56 = vsel %vm914_vm2, %v1272_v55, 0.0  ;;  %1894 = vmatpush1.bf16.msra.mxu0 %v4173_v50 }
 0x41e   : > { %1281 = vadd.xlane.f32.xlu1 %v1280_v56  ;;  %1284 = vadd.xlane.f32.xlu0 %v1283_v57  ;;  %v1411_v56 = vld [vmem:[%s5095_s2 + $0x1d8] sm:$0xff]  ;;  %v4223_v57 = vcombine.low %v1402_v52, %v1410_v53 }
 0x422   : > { %1287 = vadd.xlane.f32.xlu0 %v1286_v26 }
 0x4a3   : > { %v1279_v59 = vpop.xlane.xlu0 %1278 }
 0x4a4   : > { %v1290_v60 = vmul.f32 0.015625, %v1279_v59 }
 0x4a6   : > { %v5234_v61 = vsub.f32 %v1271_v48, %v1290_v60  ;;  %v4171_v48 = vcombine.low %v1352_v41, %v1360_v42  ;;  %v1354_v41 = vld [vmem:[%s5095_s2 + $0x10] sm:$0xff] }
 0x4a7   : > { %v1282_v62 = vpop.xlane.xlu1 %1281  ;;  %v1285_v29 = vpop.xlane.xlu0 %1284  ;;  %v1362_v42 = vld [vmem:[%s5095_s2 + $0x50] sm:$0xff] }
 0x4a8   : > { %v1291_v0 = vmul.f32 0.015625, %v1282_v62  ;;  %v1292_v1 = vmul.f32 0.015625, %v1285_v29  ;;  %v1298_v27 = vmul.f32 %v5234_v61, %v5234_v61  ;;  %1841 = vmatpush1.bf16.msra.mxu1 %v4171_v48  ;;  %v4191_v48 = vcombine.low %v1370_v31, %v1378_v32 }
 0x4aa   : > { %v5238_v2 = vsub.f32 %v1272_v55, %v1291_v0  ;;  %v5240_v30 = vsub.f32 %v1273_v54, %v1292_v1  ;;  %v1302_v3 = vsel %vm914_vm2, %v1298_v27, 0.0  ;;  %v1403_v54 = vld [vmem:[%s5095_s2 + $0x198] sm:$0xff]  ;;  %v4224_v55 = vcombine.high %v1402_v52, %v1410_v53 }
 0x4ab   : > { %1303 = vadd.xlane.f32.xlu1 %v1302_v3  ;;  %v1288_v4 = vpop.xlane.xlu0 %1287  ;;  %v4226_v26 = vcombine.high %v1403_v54, %v1411_v56  ;;  %v4176_v52 = vcombine.high %v1354_v41, %v1362_v42  ;;  %v4178_v53 = vcombine.high %v1355_v44, %v1363_v45 }
 0x4ac   : > { %v1293_v5 = vmul.f32 0.015625, %v1288_v4  ;;  %v1299_v6 = vmul.f32 %v5238_v2, %v5238_v2  ;;  %v1300_v7 = vmul.f32 %v5240_v30, %v5240_v30  ;;  %1940 = vmatprep.subr.bf16.mxu1 %v4224_v55  ;;  %v1412_v55 = vld [vmem:[%s5095_s2 + $0x1e0] sm:$0xff] }
 0x4ad   : > { %1993 = vmatprep.subr.bf16.mxu0 %v4226_v26  ;;  %v4177_v26 = vcombine.low %v1355_v44, %v1363_v45  ;;  %v1374_v44 = vld [vmem:[%s5095_s2 + $0xb0] sm:$0xff] }
 0x4ae   : > { %v5247_v8 = vsub.f32 %v1274_v58, %v1293_v5  ;;  %v1305_v9 = vsel %vm914_vm2, %v1299_v6, 0.0  ;;  %v1308_v10 = vsel %vm914_vm2, %v1300_v7, 0.0  ;;  %v4225_v58 = vcombine.low %v1403_v54, %v1411_v56  ;;  %v1404_v54 = vld [vmem:[%s5095_s2 + $0x1a0] sm:$0xff]  ;;  %v1405_v56 = vld [vmem:[%s5095_s2 + $0x1a8] sm:$0xff]  ;;  %v1382_v45 = vld [vmem:[%s5095_s2 + $0xf0] sm:$0xff] }
 0x4af   : > { %1306 = vadd.xlane.f32.xlu0 %v1305_v9  ;;  %1309 = vadd.xlane.f32.xlu1 %v1308_v10 }
 0x4b0   : > { %v1301_v11 = vmul.f32 %v5247_v8, %v5247_v8 }
 0x4b2   : > { %v1311_v12 = vsel %vm914_vm2, %v1301_v11, 0.0  ;;  %v4169_v11 = vld [vmem:[%s5811_s1] ss:$0 sm:$0xff] }
 0x4b3   : > { %1312 = vadd.xlane.f32.xlu0 %v1311_v12 }
 0x534   : > { %v1304_v59 = vpop.xlane.xlu1 %1303 }
 0x535   : > { %v1314_v60 = vmul.f32 0.015625, %v1304_v59  ;;  %v4228_v59 = vcombine.high %v1404_v54, %v1412_v55 }
 0x537   : > { %v1318_v62 = vadd.f32 1e-05, %v1314_v60 }
 0x538   : > { %v1310_v29 = vpop.xlane.xlu1 %1309  ;;  %v1307_v0 = vpop.xlane.xlu0 %1306 }
 0x539   : > { %4891 = vrsqrt.f32 %v1318_v62  ;;  %v1316_v1 = vmul.f32 0.015625, %v1310_v29  ;;  %v1315_v27 = vmul.f32 0.015625, %v1307_v0  ;;  %v1388_v62 = vld [vmem:[%s5095_s2 + $0x120] sm:$0xff]  ;;  %v1389_v0 = vld [vmem:[%s5095_s2 + $0x128] sm:$0xff] }
 0x53a   : > { %v1396_v29 = vld [vmem:[%s5095_s2 + $0x160] sm:$0xff] }
 0x53b   : > { %v1319_v3 = vadd.f32 1e-05, %v1315_v27  ;;  %v1320_v4 = vadd.f32 1e-05, %v1316_v1  ;;  %v1397_v1 = vld [vmem:[%s5095_s2 + $0x168] sm:$0xff]  ;;  %v4227_v27 = vcombine.low %v1404_v54, %v1412_v55  ;;  %v4200_v54 = vcombine.high %v1374_v44, %v1382_v45 }
 0x53c   : > { %v1313_v5 = vpop.xlane.xlu0 %1312 }
 0x53d   : > { %v1317_v6 = vmul.f32 0.015625, %v1313_v5  ;;  %4893 = vrsqrt.f32 %v1319_v3  ;;  %v4214_v5 = vcombine.high %v1389_v0, %v1397_v1 }
 0x53e   : > { %4895 = vrsqrt.f32 %v1320_v4  ;;  %v4212_v4 = vcombine.high %v1388_v62, %v1396_v29 }
 0x53f   : > { %v1321_v7 = vadd.f32 1e-05, %v1317_v6  ;;  %v1372_v6 = vld [vmem:[%s5095_s2 + $0xa0] sm:$0xff] }
 0x541   : > { %4897 = vrsqrt.f32 %v1321_v7  ;;  %v1380_v7 = vld [vmem:[%s5095_s2 + $0xe0] sm:$0xff] }
 0x546   : > { %v4892_v9 = vpop.eup %4891 }
 0x547   : > { %v1326_v10 = vmul.f32 %v4892_v9, %v5234_v61  ;;  %v1373_v9 = vld [vmem:[%s5095_s2 + $0xa8] sm:$0xff] }
 0x549   : > { %v1336_v13 = vmul.f32 %v4169_v11, %v1326_v10  ;;  %v1381_v10 = vld [vmem:[%s5095_s2 + $0xe8] sm:$0xff] }
 0x54a   : > { %v4894_v12 = vpop.eup %4893 }
 0x54b   : > { %v1327_v14 = vmul.f32 %v4894_v12, %v5238_v2  ;;  %v4896_v15 = vpop.eup %4895  ;;  %v5291_v23 = vadd.f32 %v4170_v16, %v1336_v13  ;;  %v4213_v12 = vcombine.low %v1389_v0, %v1397_v1  ;;  %v4196_v13 = vcombine.high %v1372_v6, %v1380_v7 }
 0x54c   : > { %v1328_v2 = vmul.f32 %v4896_v15, %v5240_v30  ;;  %v4207_v30 = vcombine.low %v1386_v18, %v1394_v20  ;;  %v1356_v15 = vld [vmem:[%s5095_s2 + $0x20] sm:$0xff]  ;;  %v4195_v18 = vcombine.low %v1372_v6, %v1380_v7  ;;  %v4743_v6 = vld [vmem:[%s5107_s19 + $0x70] sm:$0xff]  }
 0x54d   : > { %v1337_v61 = vmul.f32 %v4169_v11, %v1327_v14  ;;  %v4198_v14 = vcombine.high %v1373_v9, %v1381_v10  ;;  %v4744_v7 = vld [vmem:[%s5107_s19 + $0xf0] sm:$0xff]  }
 0x54e   : > { %v4898_v17 = vpop.eup %4897  ;;  %v1338_v33 = vmul.f32 %v4169_v11, %v1328_v2  ;;  %v1414_v2 = vld [vmem:[%s5095_s2 + $0x1f0] sm:$0xff] }
 0x54f   : > { %v1329_v37 = vmul.f32 %v4898_v17, %v5247_v8  ;;  %v5294_v43 = vadd.f32 %v4170_v16, %v1337_v61  ;;  %v1371_v8 = vld [vmem:[%s5095_s2 + $0x98] sm:$0xff]  ;;  %v1357_v17 = vld [vmem:[%s5095_s2 + $0x28] sm:$0xff]  ;;  %v4232_v32 = vcombine.high %v1406_v22, %v1414_v2 }
 0x550   : > { %v4194_v40 = vcombine.high %v1371_v8, %v1379_v46  ;;  %v5316_v47 = vadd.f32 %v4170_v16, %v1338_v33  ;;  %v4193_v50 = vcombine.low %v1371_v8, %v1379_v46  ;;  %v1365_v61 = vld [vmem:[%s5095_s2 + $0x68] sm:$0xff]  ;;  %v1390_v46 = vld [vmem:[%s5095_s2 + $0x130] sm:$0xff] }
 0x551   : > { %v5298_v49 = vpack.c.bf16 %v5294_v43, %v5291_v23  ;;  %v1339_v24 = vmul.f32 %v4169_v11, %v1329_v37  ;;  %v4211_v11 = vcombine.low %v1388_v62, %v1396_v29  ;;  %v4197_v37 = vcombine.low %v1373_v9, %v1381_v10  ;;  %v1398_v33 = vld [vmem:[%s5095_s2 + $0x170] sm:$0xff] }
 0x552   : > { %v4182_v21 = vcombine.high %v1357_v17, %v1365_v61  ;;  %v4181_v31 = vcombine.low %v1357_v17, %v1365_v61  ;;  %v4745_v9 = vld [vmem:[%s5107_s19 + $0x30] sm:$0xff]   ;;  %v4755_v17 = vld [vmem:[%s5107_s19 + $0x58] sm:$0xff]  }
 0x553   : > { %4235 = vmatmul.mubr.msk.bf16.vlgmr.msra.gmra.mxu1 %vm914_vm2, %v5298_v49  ;;  %4237 = vmatmul.mubr.msk.bf16.vlgmr.msra.gmra.mxu0 %vm914_vm2, %v5298_v49  ;;  %v5308_v38 = vadd.f32 %v4170_v16, %v1339_v24  ;;  %v1364_v16 = vld [vmem:[%s5095_s2 + $0x60] sm:$0xff]  ;;  %v1407_v24 = vld [vmem:[%s5095_s2 + $0x1b8] sm:$0xff]  ;;  %v4746_v10 = vld [vmem:[%s5107_s19 + $0xb0] sm:$0xff]  }
 0x554   : > { %1941 = vmatpush1.bf16.msra.mxu1 %v4223_v57  ;;  %1994 = vmatpush1.bf16.msra.mxu0 %v4225_v58  ;;  %v1413_v57 = vld [vmem:[%s5095_s2 + $0x1e8] sm:$0xff]  ;;  %v4175_v58 = vcombine.low %v1354_v41, %v1362_v42  ;;  %v4180_v20 = vcombine.high %v1356_v15, %v1364_v16  ;;  %v4216_v41 = vcombine.high %v1390_v46, %v1398_v33  ;;  %v4756_v61 = vld [vmem:[%s5107_s19 + $0xd8] sm:$0xff]  }
 0x555   : > { %5813 = vst [vmem:[#allocation8_spill] sm:$0xff] %v5308_v38  ;;  %1942 = vmatprep.subr.bf16.mxu1 %v4208_v25  ;;  %1995 = vmatprep.subr.bf16.mxu0 %v4210_v28  ;;  %v5320_v51 = vpack.c.bf16 %v5308_v38, %v5316_v47  ;;  %v4230_v60 = vcombine.high %v1405_v56, %v1413_v57  ;;  %v1415_v25 = vld [vmem:[%s5095_s2 + $0x1f8] sm:$0xff] }
 0x556   : > { %1868 = vmatprep.mubr.bf16.mxu1 %v4947_v19  ;;  %1921 = vmatprep.mubr.bf16.mxu0 %v4947_v19  ;;  %v4229_v3 = vcombine.low %v1405_v56, %v1413_v57  ;;  %v4179_v28 = vcombine.low %v1356_v15, %v1364_v16  ;;  %v4234_v8 = vcombine.high %v1407_v24, %v1415_v25  ;;  %v1358_v56 = vld [vmem:[%s5095_s2 + $0x30] sm:$0xff]  ;;  %v4753_v15 = vld [vmem:[%s5107_s19 + $0x20] sm:$0xff]  }
 0x557   : > { %v1366_v57 = vld [vmem:[%s5095_s2 + $0x70] sm:$0xff]  ;;  %v4754_v16 = vld [vmem:[%s5107_s19 + $0xa0] sm:$0xff]  }
 0x558   : > { %1943 = vmatpush1.bf16.msra.mxu1 %v4207_v30  ;;  %1996 = vmatpush1.bf16.msra.mxu0 %v4209_v35  ;;  %v1391_v30 = vld [vmem:[%s5095_s2 + $0x138] sm:$0xff]  ;;  %v4184_v62 = vcombine.high %v1358_v56, %v1366_v57  ;;  %v4183_v0 = vcombine.low %v1358_v56, %v1366_v57 }
 0x559   : > { %1944 = vmatprep.subr.bf16.mxu1 %v4192_v39  ;;  %1997 = vmatprep.subr.bf16.mxu0 %v4194_v40  ;;  %v1399_v35 = vld [vmem:[%s5095_s2 + $0x178] sm:$0xff]  ;;  %v4231_v39 = vcombine.low %v1406_v22, %v1414_v2  ;;  %v4233_v40 = vcombine.low %v1407_v24, %v1415_v25  ;;  %v4762_v22 = vld [vmem:[%s5107_s19 + $0x90] sm:$0xff]   ;;  %v4763_v2 = vld [vmem:[%s5107_s19 + $0x48] sm:$0xff]  }
 0x55a   : > { %v4218_v42 = vcombine.high %v1391_v30, %v1399_v35  ;;  %v4764_v24 = vld [vmem:[%s5107_s19 + $0xc8] sm:$0xff]  }
 0x55b   : > { %4236 = vmatmul.mubr.msk.bf16.gmra.mxu1 %vm914_vm2, %v5320_v51  ;;  %4238 = vmatmul.mubr.msk.bf16.gmra.mxu0 %vm914_vm2, %v5320_v51  ;;  %v4765_v25 = vld [vmem:[%s5107_s19 + $0x8] sm:$0xff]  }
 0x55c   : > { %1945 = vmatpush1.bf16.msra.mxu1 %v4191_v48  ;;  %1998 = vmatpush1.bf16.msra.mxu0 %v4193_v50  ;;  %v1375_v48 = vld [vmem:[%s5095_s2 + $0xb8] sm:$0xff] }
 0x55d   : > { %1946 = vmatprep.subr.bf16.mxu1 %v4176_v52  ;;  %1999 = vmatprep.subr.bf16.mxu0 %v4178_v53  ;;  %v1383_v50 = vld [vmem:[%s5095_s2 + $0xf8] sm:$0xff]  ;;  %v4215_v52 = vcombine.low %v1390_v46, %v1398_v33  ;;  %v4217_v53 = vcombine.low %v1391_v30, %v1399_v35  ;;  %v4770_v46 = vld [vmem:[%s5107_s19 + $0x80] sm:$0xff]   ;;  %v1434_v35 = vsub.s32 3, %v5176_v34 }
 0x55e   : > { %1964 = vmatprep.mubr.bf16.mxu1 %v4947_v19  ;;  %2017 = vmatprep.mubr.bf16.mxu0 %v4947_v19  ;;  %v4202_v55 = vcombine.high %v1375_v48, %v1383_v50  ;;  %v4771_v33 = vld [vmem:[%s5107_s19 + $0x178] sm:$0xff]  }
 0x55f   : > { %v4772_v30 = vld [vmem:[%s5107_s19 + $0x1f8] sm:$0xff]  }
 0x560   : > { %1947 = vmatpush1.bf16.msra.mxu1 %v4175_v58  ;;  %2000 = vmatpush1.bf16.msra.mxu0 %v4177_v26  ;;  %v1359_v58 = vld [vmem:[%s5095_s2 + $0x38] sm:$0xff] }
 0x561   : > { %2046 = vmatprep.subr.bf16.mxu1 %v4228_v59  ;;  %2099 = vmatprep.subr.bf16.mxu0 %v4230_v60  ;;  %v1367_v26 = vld [vmem:[%s5095_s2 + $0x78] sm:$0xff]  ;;  %v4199_v59 = vcombine.low %v1374_v44, %v1382_v45  ;;  %v4201_v60 = vcombine.low %v1375_v48, %v1383_v50  ;;  %s5816_s2 = sld [smem:[#allocation13_spill]] (!%p4382_p5) }
 0x562   : > { %v4186_v29 = vcombine.high %v1359_v58, %v1367_v26  ;;  %v4185_v1 = vcombine.low %v1359_v58, %v1367_v26 }
 0x563   : > { %4239 = vmatmul.mubr.msk.bf16.vlgmr.msra.gmra.mxu1 %vm914_vm2, %v5298_v49  ;;  %4241 = vmatmul.mubr.msk.bf16.vlgmr.msra.gmra.mxu0 %vm914_vm2, %v5298_v49 }
 0x564   : > { %2047 = vmatpush1.bf16.msra.mxu1 %v4227_v27  ;;  %2100 = vmatpush1.bf16.msra.mxu0 %v4229_v3  ;;  %v4739_v27 = vld [vmem:[%s5107_s19 + $0x78] sm:$0xff]  }
 0x565   : > { %2048 = vmatprep.subr.bf16.mxu1 %v4212_v4  ;;  %2101 = vmatprep.subr.bf16.mxu0 %v4214_v5  ;;  %v4740_v3 = vld [vmem:[%s5107_s19 + $0xf8] sm:$0xff]  }
 0x566   : > { %1974 = vmatprep.mubr.bf16.mxu1 %v4947_v19  ;;  %2027 = vmatprep.mubr.bf16.mxu0 %v4947_v19  ;;  %v4741_v4 = vld [vmem:[%s5107_s19 + $0x38] sm:$0xff]  }
 0x567   : > { %v4742_v5 = vld [vmem:[%s5107_s19 + $0xb8] sm:$0xff]  }
 0x568   : > { %2049 = vmatpush1.bf16.msra.mxu1 %v4211_v11  ;;  %2102 = vmatpush1.bf16.msra.mxu0 %v4213_v12  ;;  %v4747_v11 = vld [vmem:[%s5107_s19 + $0x68] sm:$0xff]  }
 0x569   : > { %2050 = vmatprep.subr.bf16.mxu1 %v4196_v13  ;;  %2103 = vmatprep.subr.bf16.mxu0 %v4198_v14  ;;  %v4748_v12 = vld [vmem:[%s5107_s19 + $0xe8] sm:$0xff]   ;;  %v4752_v14 = vld [vmem:[%s5107_s19 + $0xe0] sm:$0xff]  }
 0x56a   : > { %v4750_v13 = vld [vmem:[%s5107_s19 + $0xa8] sm:$0xff]  }
 0x56b   : > { %4240 = vmatmul.mubr.msk.bf16.gmra.mxu1 %vm914_vm2, %v5320_v51  ;;  %4242 = vmatmul.mubr.msk.bf16.gmra.mxu0 %vm914_vm2, %v5320_v51 }
 0x56c   : > { %2051 = vmatpush1.bf16.msra.mxu1 %v4195_v18  ;;  %2104 = vmatpush1.bf16.msra.mxu0 %v4197_v37  ;;  %v4757_v18 = vld [vmem:[%s5107_s19 + $0x18] sm:$0xff]  }
 0x56d   : > { %2052 = vmatprep.subr.bf16.mxu1 %v4180_v20  ;;  %2105 = vmatprep.subr.bf16.mxu0 %v4182_v21  ;;  %v4758_v37 = vld [vmem:[%s5107_s19 + $0x98] sm:$0xff]   ;;  %v4760_v20 = vld [vmem:[%s5107_s19 + $0xd0] sm:$0xff]  }
 0x56e   : > { %2070 = vmatprep.mubr.bf16.mxu1 %v4947_v19  ;;  %2123 = vmatprep.mubr.bf16.mxu0 %v4947_v19  ;;  %v4761_v21 = vld [vmem:[%s5107_s19 + $0x10] sm:$0xff]  }
 0x570   : > { %2053 = vmatpush1.bf16.msra.mxu1 %v4179_v28  ;;  %2106 = vmatpush1.bf16.msra.mxu0 %v4181_v31  ;;  %v4766_v28 = vld [vmem:[%s5107_s19 + $0x88] sm:$0xff]   ;;  %v4767_v31 = vld [vmem:[%s5107_s19 + $0x40] sm:$0xff]  }
 0x571   : > { %2152 = vmatprep.subr.bf16.mxu1 %v4232_v32  ;;  %2205 = vmatprep.subr.bf16.mxu0 %v4234_v8  ;;  %v4768_v32 = vld [vmem:[%s5107_s19 + $0xc0] sm:$0xff]  }
 0x572   : > { %v4769_v8 = vld [vmem:[%s5107_s19] sm:$0xff]  }
 0x573   : > { %4243 = vmatmul.mubr.msk.bf16.vlgmr.msra.gmra.mxu1 %vm914_vm2, %v5298_v49  ;;  %4245 = vmatmul.mubr.msk.bf16.vlgmr.msra.gmra.mxu0 %vm914_vm2, %v5298_v49 }
 0x574   : > { %2153 = vmatpush1.bf16.msra.mxu1 %v4231_v39  ;;  %2206 = vmatpush1.bf16.msra.mxu0 %v4233_v40  ;;  %v1430_v39 = vsub.s32 2, %v5176_v34  ;;  %v5431_v40 = vld [vmem:[%s5101_s18] sm:$0xff] }
 0x575   : > { %2154 = vmatprep.subr.bf16.mxu1 %v4216_v41  ;;  %2207 = vmatprep.subr.bf16.mxu0 %v4218_v42  ;;  %v1427_v44 = vrot.slane %v5431_v40, %v5211_v63  ;;  %v1435_v45 = vrot.slane %v5431_v40, %v1434_v35  ;;  %v1423_v48 = vrot.slane %v5431_v40, %v5182_v36 }
 0x576   : > { %2080 = vmatprep.mubr.bf16.mxu1 %v4947_v19  ;;  %2133 = vmatprep.mubr.bf16.mxu0 %v4947_v19  ;;  %v1431_v50 = vrot.slane %v5431_v40, %v1430_v39 }
 0x578   : > { %2155 = vmatpush1.bf16.msra.mxu1 %v4215_v52  ;;  %2208 = vmatpush1.bf16.msra.mxu0 %v4217_v53 }
 0x579   : > { %2156 = vmatprep.subr.bf16.mxu1 %v4200_v54  ;;  %2209 = vmatprep.subr.bf16.mxu0 %v4202_v55 }
 0x57b   : > { %4244 = vmatmul.mubr.msk.bf16.gmra.mxu1 %vm914_vm2, %v5320_v51  ;;  %4246 = vmatmul.mubr.msk.bf16.gmra.mxu0 %vm914_vm2, %v5320_v51 }
 0x57c   : > { %2157 = vmatpush1.bf16.msra.mxu1 %v4199_v59  ;;  %2210 = vmatpush1.bf16.msra.mxu0 %v4201_v60 }
 0x57d   : > { %2158 = vmatprep.subr.bf16.mxu1 %v4184_v62  ;;  %2211 = vmatprep.subr.bf16.mxu0 %v4186_v29 }
 0x57e   : > { %2176 = vmatprep.mubr.bf16.mxu1 %v4947_v19  ;;  %2229 = vmatprep.mubr.bf16.mxu0 %v4947_v19 }
 0x580   : > { %2159 = vmatpush1.bf16.msra.mxu1 %v4183_v0  ;;  %2212 = vmatpush1.bf16.msra.mxu0 %v4185_v1 }
 0x581   : > { %4416 = vmatprep.subr.bf16.mxu1 %v4739_v27  ;;  %4444 = vmatprep.subr.bf16.mxu0 %v4740_v3 }
 0x583   : > { %4247 = vmatmul.mubr.msk.bf16.vlgmr.msra.gmra.mxu1 %vm914_vm2, %v5298_v49  ;;  %4249 = vmatmul.mubr.msk.bf16.vlgmr.msra.gmra.mxu0 %vm914_vm2, %v5298_v49  ;;  %v4749_v49 = vld [vmem:[%s5107_s19 + $0x28] sm:$0xff]  }
 0x584   : > { %2186 = vmatprep.mubr.bf16.mxu1 %v4947_v19  ;;  %2239 = vmatprep.mubr.bf16.mxu0 %v4947_v19  ;;  %v4751_v19 = vld [vmem:[%s5107_s19 + $0x60] sm:$0xff]  }
 0x585   : > { %4417 = vmatpush3.bf16.msra.mxu1 %v4741_v4  ;;  %4445 = vmatpush3.bf16.msra.mxu0 %v4742_v5 }
 0x586   : > { %4418 = vmatprep.subr.bf16.mxu1 %v4743_v6  ;;  %4446 = vmatprep.subr.bf16.mxu0 %v4744_v7 }
 0x589   : > { %4419 = vmatpush3.bf16.msra.mxu1 %v4745_v9  ;;  %4447 = vmatpush3.bf16.msra.mxu0 %v4746_v10 }
 0x58a   : > { %4420 = vmatprep.subr.bf16.mxu1 %v4747_v11  ;;  %4448 = vmatprep.subr.bf16.mxu0 %v4748_v12 }
 0x58b   : > { %4248 = vmatmul.mubr.msk.bf16.gmra.mxu1 %vm914_vm2, %v5320_v51  ;;  %4250 = vmatmul.mubr.msk.bf16.gmra.mxu0 %vm914_vm2, %v5320_v51  ;;  %v4759_v51 = vld [vmem:[%s5107_s19 + $0x50] sm:$0xff]  }
 0x58d   : > { %4421 = vmatpush3.bf16.msra.mxu1 %v4749_v49  ;;  %4449 = vmatpush3.bf16.msra.mxu0 %v4750_v13 }
 0x58e   : > { %4422 = vmatprep.subr.bf16.mxu1 %v4751_v19  ;;  %4450 = vmatprep.subr.bf16.mxu0 %v4752_v14 }
 0x591   : > { %4423 = vmatpush3.bf16.msra.mxu1 %v4753_v15  ;;  %4451 = vmatpush3.bf16.msra.mxu0 %v4754_v16  ;;  %v4773_v15 = vld [vmem:[%s5107_s19 + $0x138] sm:$0xff]  }
 0x592   : > { %4424 = vmatprep.subr.bf16.mxu1 %v4755_v17  ;;  %4452 = vmatprep.subr.bf16.mxu0 %v4756_v61  ;;  %v4774_v16 = vld [vmem:[%s5107_s19 + $0x1b8] sm:$0xff]   ;;  %v1442_v17 = vsub.s32 5, %v5176_v34 }
 0x595   : > { %4425 = vmatpush3.bf16.msra.mxu1 %v4757_v18  ;;  %4453 = vmatpush3.bf16.msra.mxu0 %v4758_v37 }
 0x596   : > { %4426 = vmatprep.subr.bf16.mxu1 %v4759_v51  ;;  %4454 = vmatprep.subr.bf16.mxu0 %v4760_v20 }
 0x599   : > { %4427 = vmatpush3.bf16.msra.mxu1 %v4761_v21  ;;  %4455 = vmatpush3.bf16.msra.mxu0 %v4762_v22  ;;  %v4775_v21 = vld [vmem:[%s5107_s19 + $0x170] sm:$0xff]  }
 0x59a   : > { %4428 = vmatprep.subr.bf16.mxu1 %v4763_v2  ;;  %4456 = vmatprep.subr.bf16.mxu0 %v4764_v24  ;;  %v4776_v22 = vld [vmem:[%s5107_s19 + $0x1f0] sm:$0xff]   ;;  %v1450_v2 = vsub.s32 7, %v5176_v34 }
 0x59d   : > { %4429 = vmatpush3.bf16.msra.mxu1 %v4765_v25  ;;  %4457 = vmatpush3.bf16.msra.mxu0 %v4766_v28 }
 0x59e   : > { %4430 = vmatprep.subr.bf16.mxu1 %v4767_v31  ;;  %4458 = vmatprep.subr.bf16.mxu0 %v4768_v32 }
 0x5a1   : > { %4431 = vmatpush3.bf16.msra.mxu1 %v4769_v8  ;;  %4459 = vmatpush3.bf16.msra.mxu0 %v4770_v46 }
 0x5a2   : > { %4472 = vmatprep.subr.bf16.mxu1 %v4771_v33  ;;  %4500 = vmatprep.subr.bf16.mxu0 %v4772_v30 }
 0x613   : > { %v1860_v41 = vpop.f32.mrf.mxu1  ;;  %v1913_v42 = vpop.f32.mrf.mxu0 }
 0x614   : > { %v1861_v59 = vadd.f32 %v1860_v41, %v1423_v48  ;;  %v1914_v60 = vadd.f32 %v1913_v42, %v1431_v50  ;;  %v4777_v41 = vld [vmem:[%s5107_s19 + $0x130] sm:$0xff]  }
 0x615   : > { %v1862_v52 = vpop.f32.mrf.mxu1  ;;  %v1915_v53 = vpop.f32.mrf.mxu0 }
 0x616   : > { %v1863_v56 = vadd.f32 %v1862_v52, %v1427_v44  ;;  %v1916_v57 = vadd.f32 %v1915_v53, %v1435_v45  ;;  %v2250_v11 = vmax.f32 %v1861_v59, 0.0  ;;  %v2252_v12 = vmax.f32 %v1914_v60, 0.0 }
 0x617   : > { %v1864_v54 = vpop.f32.mrf.mxu1  ;;  %v1917_v55 = vpop.f32.mrf.mxu0 }
 0x618   : > { %v1865_v58 = vadd.f32 %v1864_v54, %v1423_v48  ;;  %v1918_v26 = vadd.f32 %v1917_v55, %v1431_v50  ;;  %v2251_v6 = vmax.f32 %v1863_v56, 0.0  ;;  %v2253_v7 = vmax.f32 %v1916_v57, 0.0 }
 0x619   : > { %v1866_v62 = vpop.f32.mrf.mxu1  ;;  %v1919_v29 = vpop.f32.mrf.mxu0 }
 0x61a   : > { %v1867_v0 = vadd.f32 %v1866_v62, %v1427_v44  ;;  %v1920_v1 = vadd.f32 %v1919_v29, %v1435_v45  ;;  %v2266_v27 = vmax.f32 %v1865_v58, 0.0  ;;  %v2268_v3 = vmax.f32 %v1918_v26, 0.0  ;;  %v4780_v62 = vld [vmem:[%s5107_s19 + $0x1e8] sm:$0xff]  }
 0x61b   : > { %v1870_v4 = vpop.f32.mrf.mxu1  ;;  %v1923_v5 = vpop.f32.mrf.mxu0 }
 0x61c   : > { %v2267_v9 = vmax.f32 %v1867_v0, 0.0  ;;  %v2269_v10 = vmax.f32 %v1920_v1, 0.0  ;;  %v2314_v61 = vpack.c.bf16 %v2266_v27, %v2250_v11  ;;  %v2316_v18 = vpack.c.bf16 %v2268_v3, %v2252_v12  ;;  %v4781_v27 = vld [vmem:[%s5107_s19 + $0x128] sm:$0xff]   ;;  %v4784_v12 = vld [vmem:[%s5107_s19 + $0x1e0] sm:$0xff]  }
 0x61d   : > { %v1872_v49 = vpop.f32.mrf.mxu1  ;;  %v1925_v13 = vpop.f32.mrf.mxu0  ;;  %v1871_v31 = vadd.f32 %v1870_v4, %v1423_v48  ;;  %v1924_v46 = vadd.f32 %v1923_v5, %v1431_v50 }
 0x61e   : > { %v2315_v19 = vpack.c.bf16 %v2267_v9, %v2251_v6  ;;  %v2317_v14 = vpack.c.bf16 %v2269_v10, %v2253_v7  ;;  %v1873_v37 = vadd.f32 %v1872_v49, %v1427_v44  ;;  %v1926_v24 = vadd.f32 %v1925_v13, %v1435_v45  ;;  %v4782_v6 = vld [vmem:[%s5107_s19 + $0x1a8] sm:$0xff]   ;;  %v4783_v7 = vld [vmem:[%s5107_s19 + $0x160] sm:$0xff]  }
 0x61f   : > { %v1874_v51 = vpop.f32.mrf.mxu1  ;;  %v1927_v20 = vpop.f32.mrf.mxu0  ;;  %v2282_v26 = vmax.f32 %v1871_v31, 0.0  ;;  %v2284_v29 = vmax.f32 %v1924_v46, 0.0 }
 0x620   : > { %v1875_v25 = vadd.f32 %v1874_v51, %v1423_v48  ;;  %v1928_v28 = vadd.f32 %v1927_v20, %v1431_v50  ;;  %3409 = vmatprep.mubr.bf16.mxu1 %v2315_v19  ;;  %3458 = vmatprep.mubr.bf16.mxu0 %v2317_v14  ;;  %v2283_v42 = vmax.f32 %v1873_v37, 0.0  ;;  %v5457_v48 = vrot.slane %v5431_v40, %v1442_v17  ;;  %v4779_v50 = vld [vmem:[%s5107_s19 + $0x168] sm:$0xff]   ;;  %v4787_v37 = vld [vmem:[%s5107_s19 + $0x158] sm:$0xff]  }
 0x621   : > { %v1876_v32 = vpop.f32.mrf.mxu1  ;;  %v1929_v8 = vpop.f32.mrf.mxu0  ;;  %3410 = vmatmul.mubr.bf16.vlgmr.msra.gmra.mxu1 %v2314_v61  ;;  %3459 = vmatmul.mubr.bf16.vlgmr.msra.gmra.mxu0 %v2316_v18  ;;  %v2285_v55 = vmax.f32 %v1926_v24, 0.0  ;;  %v4786_v18 = vld [vmem:[%s5107_s19 + $0x1a0] sm:$0xff]   ;;  %v4788_v24 = vld [vmem:[%s5107_s19 + $0x1d8] sm:$0xff]  }
 0x622   : > { %v1877_v33 = vadd.f32 %v1876_v32, %v1427_v44  ;;  %v1930_v30 = vadd.f32 %v1929_v8, %v1435_v45  ;;  %4473 = vmatpush3.bf16.msra.mxu1 %v4773_v15  ;;  %4501 = vmatpush3.bf16.msra.mxu0 %v4774_v16  ;;  %v2298_v52 = vmax.f32 %v1875_v25, 0.0  ;;  %v5462_v44 = vrot.slane %v5431_v40, %v1450_v2  ;;  %v4778_v45 = vld [vmem:[%s5107_s19 + $0x1b0] sm:$0xff]   ;;  %v4785_v15 = vld [vmem:[%s5107_s19 + $0x120] sm:$0xff]   ;;  %v4789_v8 = vld [vmem:[%s5107_s19 + $0x118] sm:$0xff]  }
 0x623   : > { %v5450_v53 = vpop.f32.mrf.mxu1  ;;  %v5452_v54 = vpop.f32.mrf.mxu0  ;;  %4474 = vmatprep.subr.bf16.mxu1 %v4775_v21  ;;  %4502 = vmatprep.subr.bf16.mxu0 %v4776_v22  ;;  %v2300_v56 = vmax.f32 %v1928_v28, 0.0 }
 0x624   : > { %v2299_v57 = vmax.f32 %v1877_v33, 0.0  ;;  %v2301_v58 = vmax.f32 %v1930_v30, 0.0  ;;  %v2330_v3 = vpack.c.bf16 %v2298_v52, %v2282_v26  ;;  %v4790_v30 = vld [vmem:[%s5107_s19 + $0x198] sm:$0xff]   ;;  %v1438_v52 = vsub.s32 4, %v5176_v34  ;;  %v4794_v26 = vld [vmem:[%s5107_s19 + $0x190] sm:$0xff]  }
 0x625   : > { %v1968_v59 = vpop.f32.mrf.mxu1  ;;  %v2021_v60 = vpop.f32.mrf.mxu0  ;;  %v2332_v9 = vpack.c.bf16 %v2300_v56, %v2284_v29  ;;  %v4793_v56 = vld [vmem:[%s5107_s19 + $0x110] sm:$0xff]  }
 0x626   : > { %v2331_v0 = vpack.c.bf16 %v2299_v57, %v2283_v42  ;;  %v2333_v1 = vpack.c.bf16 %v2301_v58, %v2285_v55  ;;  %4475 = vmatpush3.bf16.msra.mxu1 %v4777_v41  ;;  %4503 = vmatpush3.bf16.msra.mxu0 %v4778_v45  ;;  %v1969_v10 = vadd.f32 %v1968_v59, %v5457_v48  ;;  %v4791_v41 = vld [vmem:[%s5107_s19 + $0x150] sm:$0xff]   ;;  %v1446_v55 = vsub.s32 6, %v5176_v34  ;;  %v4795_v59 = vld [vmem:[%s5107_s19 + $0x148] sm:$0xff]  }
 0x627   : > { %v5468_v4 = vpop.f32.mrf.mxu1  ;;  %v5470_v5 = vpop.f32.mrf.mxu0  ;;  %4476 = vmatprep.subr.bf16.mxu1 %v4779_v50  ;;  %v2022_v11 = vadd.f32 %v2021_v60, %v5462_v44  ;;  %4504 = vmatprep.subr.bf16.mxu0 %v4780_v62  ;;  %v4792_v42 = vld [vmem:[%s5107_s19 + $0x1d0] sm:$0xff]   ;;  %v4796_v60 = vld [vmem:[%s5107_s19 + $0x1c8] sm:$0xff]   ;;  %v1439_v62 = vrot.slane %v5431_v40, %v1438_v52 }
 0x628   : > { %3417 = vmatprep.mubr.bf16.mxu1 %v2331_v0  ;;  %3466 = vmatprep.mubr.bf16.mxu0 %v2333_v1  ;;  %v2255_v51 = vmax.f32 %v1969_v10, 0.0  ;;  %v1447_v0 = vrot.slane %v5431_v40, %v1446_v55 }
 0x629   : > { %v1972_v49 = vpop.f32.mrf.mxu1  ;;  %v2025_v13 = vpop.f32.mrf.mxu0  ;;  %3418 = vmatmul.mubr.bf16.gmra.mxu1 %v2330_v3  ;;  %3467 = vmatmul.mubr.bf16.gmra.mxu0 %v2332_v9  ;;  %v2257_v20 = vmax.f32 %v2022_v11, 0.0  ;;  %v1971_v3 = vadd.f32 %v5468_v4, %v1439_v62  ;;  %v4800_v11 = vld [vmem:[%s5107_s19 + $0x1c0] sm:$0xff]   ;;  %v1967_v40 = vadd.f32 %v5450_v53, %v1439_v62 }
 0x62a   : > { %v1973_v19 = vadd.f32 %v1972_v49, %v5457_v48  ;;  %v2026_v14 = vadd.f32 %v2025_v13, %v5462_v44  ;;  %4477 = vmatpush3.bf16.msra.mxu1 %v4781_v27  ;;  %4505 = vmatpush3.bf16.msra.mxu0 %v4782_v6  ;;  %v4797_v27 = vld [vmem:[%s5107_s19 + $0x108] sm:$0xff]   ;;  %v2024_v9 = vadd.f32 %v5470_v5, %v1447_v0  ;;  %v4801_v5 = vld [vmem:[%s5107_s19 + $0x100] sm:$0xff]  }
 0x62b   : > { %v5480_v16 = vpop.f32.mrf.mxu1  ;;  %v5482_v61 = vpop.f32.mrf.mxu0  ;;  %4478 = vmatprep.subr.bf16.mxu1 %v4783_v7  ;;  %4506 = vmatprep.subr.bf16.mxu0 %v4784_v12  ;;  %v4798_v6 = vld [vmem:[%s5107_s19 + $0x188] sm:$0xff]   ;;  %v4799_v7 = vld [vmem:[%s5107_s19 + $0x140] sm:$0xff]   ;;  %v2020_v4 = vadd.f32 %v5452_v54, %v1447_v0  ;;  %v2254_v54 = vmax.f32 %v1967_v40, 0.0 }
 0x62c   : > { %v2271_v21 = vmax.f32 %v1973_v19, 0.0  ;;  %v2273_v22 = vmax.f32 %v2026_v14, 0.0  ;;  %v2270_v14 = vmax.f32 %v1971_v3, 0.0  ;;  %v4802_v53 = vld [vmem:[%s5107_s19 + $0x180] sm:$0xff]   ;;  %v4812_v40 = vld [vmem:[%s5107_s19 + $0x2e8] sm:$0xff]  }
 0x62d   : > { %v1978_v25 = vpop.f32.mrf.mxu1  ;;  %v2031_v28 = vpop.f32.mrf.mxu0 }
 0x62e   : > { %v2319_v31 = vpack.c.bf16 %v2271_v21, %v2255_v51  ;;  %v2321_v32 = vpack.c.bf16 %v2273_v22, %v2257_v20  ;;  %4479 = vmatpush3.bf16.msra.mxu1 %v4785_v15  ;;  %4507 = vmatpush3.bf16.msra.mxu0 %v4786_v18  ;;  %v1979_v13 = vadd.f32 %v1978_v25, %v5457_v48  ;;  %v4803_v18 = vld [vmem:[%s5107_s19 + $0x278] sm:$0xff]  }
 0x62f   : > { %v5488_v46 = vpop.f32.mrf.mxu1  ;;  %v5490_v33 = vpop.f32.mrf.mxu0  ;;  %4480 = vmatprep.subr.bf16.mxu1 %v4787_v37  ;;  %4508 = vmatprep.subr.bf16.mxu0 %v4788_v24  ;;  %v2032_v15 = vadd.f32 %v2031_v28, %v5462_v44  ;;  %v2272_v37 = vmax.f32 %v2024_v9, 0.0  ;;  %v4804_v20 = vld [vmem:[%s5107_s19 + $0x2f8] sm:$0xff]   ;;  %v2256_v24 = vmax.f32 %v2020_v4, 0.0 }
 0x630   : > { %3507 = vmatprep.mubr.bf16.mxu1 %v2319_v31  ;;  %3556 = vmatprep.mubr.bf16.mxu0 %v2321_v32  ;;  %v2287_v25 = vmax.f32 %v1979_v13, 0.0  ;;  %v2318_v31 = vpack.c.bf16 %v2270_v14, %v2254_v54  ;;  %v4816_v54 = vld [vmem:[%s5107_s19 + $0x2e0] sm:$0xff]  }
 0x631   : > { %v1982_v45 = vpop.f32.mrf.mxu1  ;;  %v2035_v50 = vpop.f32.mrf.mxu0  ;;  %v2289_v32 = vmax.f32 %v2032_v15, 0.0  ;;  %v4813_v15 = vld [vmem:[%s5107_s19 + $0x228] sm:$0xff]  }
 0x632   : > { %4481 = vmatpush3.bf16.msra.mxu1 %v4789_v8  ;;  %4509 = vmatpush3.bf16.msra.mxu0 %v4790_v30  ;;  %v1983_v10 = vadd.f32 %v1982_v45, %v5457_v48  ;;  %v2036_v12 = vadd.f32 %v2035_v50, %v5462_v44  ;;  %v5534_v48 = vld [vmem:[%s5101_s18 + $0x8] sm:$0xff]  ;;  %v1981_v8 = vadd.f32 %v5488_v46, %v1439_v62 }
 0x633   : > { %v5498_v57 = vpop.f32.mrf.mxu1  ;;  %v5500_v58 = vpop.f32.mrf.mxu0  ;;  %4482 = vmatprep.subr.bf16.mxu1 %v4791_v41  ;;  %4510 = vmatprep.subr.bf16.mxu0 %v4792_v42  ;;  %v5538_v44 = vrot.slane %v5534_v48, %v5211_v63  ;;  %v5544_v30 = vrot.slane %v5534_v48, %v1434_v35  ;;  %v4805_v41 = vld [vmem:[%s5107_s19 + $0x238] sm:$0xff]   ;;  %v2320_v42 = vpack.c.bf16 %v2272_v37, %v2256_v24  ;;  %v4808_v35 = vld [vmem:[%s5107_s19 + $0x2f0] sm:$0xff]   ;;  %v4814_v37 = vld [vmem:[%s5107_s19 + $0x2a8] sm:$0xff]  }
 0x634   : > { %v2303_v51 = vmax.f32 %v1983_v10, 0.0  ;;  %v2305_v21 = vmax.f32 %v2036_v12, 0.0  ;;  %v2034_v63 = vadd.f32 %v5490_v33, %v1447_v0  ;;  %v1977_v46 = vadd.f32 %v5480_v16, %v1439_v62  ;;  %v4817_v24 = vld [vmem:[%s5107_s19 + $0x220] sm:$0xff]  }
 0x635   : > { %v2074_v29 = vpop.f32.mrf.mxu1  ;;  %v5511_v1 = vpop.f32.mrf.mxu0 }
 0x636   : > { %4483 = vmatpush3.bf16.msra.mxu1 %v4793_v56  ;;  %4511 = vmatpush3.bf16.msra.mxu0 %v4794_v26  ;;  %v2335_v45 = vpack.c.bf16 %v2303_v51, %v2287_v25  ;;  %v4806_v56 = vld [vmem:[%s5107_s19 + $0x2b8] sm:$0xff]   ;;  %v4807_v26 = vld [vmem:[%s5107_s19 + $0x270] sm:$0xff]   ;;  %v2075_v33 = vadd.f32 %v2074_v29, %v5538_v44  ;;  %v2128_v16 = vadd.f32 %v5511_v1, %v5544_v30  ;;  %v2304_v9 = vmax.f32 %v2034_v63, 0.0  ;;  %v4811_v29 = vld [vmem:[%s5107_s19 + $0x268] sm:$0xff]  }
 0x637   : > { %4484 = vmatprep.subr.bf16.mxu1 %v4795_v59  ;;  %4512 = vmatprep.subr.bf16.mxu0 %v4796_v60  ;;  %v5522_v49 = vpop.f32.mrf.mxu1  ;;  %v5526_v19 = vpop.f32.mrf.mxu0  ;;  %v2337_v59 = vpack.c.bf16 %v2305_v21, %v2289_v32  ;;  %v4815_v51 = vld [vmem:[%s5107_s19 + $0x260] sm:$0xff]   ;;  %v4823_v63 = vld [vmem:[%s5107_s19 + $0x250] sm:$0xff]  }
 0x638   : > { %v2259_v1 = vmax.f32 %v2075_v33, 0.0  ;;  %v4818_v25 = vld [vmem:[%s5107_s19 + $0x2a0] sm:$0xff]   ;;  %v1463_v33 = vrot.slane %v5534_v48, %v1430_v39 }
 0x639   : > { %v2078_v22 = vpop.f32.mrf.mxu1  ;;  %v2131_v28 = vpop.f32.mrf.mxu0 }
 0x63a   : > { %4485 = vmatpush3.bf16.msra.mxu1 %v4797_v27  ;;  %4513 = vmatpush3.bf16.msra.mxu0 %v4798_v6  ;;  %v2079_v50 = vadd.f32 %v2078_v22, %v5538_v44  ;;  %v2132_v60 = vadd.f32 %v2131_v28, %v5544_v30  ;;  %v2030_v27 = vadd.f32 %v5482_v61, %v1447_v0  ;;  %v2302_v6 = vmax.f32 %v1981_v8, 0.0  ;;  %v4810_v61 = vld [vmem:[%s5107_s19 + $0x2b0] sm:$0xff]   ;;  %v4819_v28 = vld [vmem:[%s5107_s19 + $0x258] sm:$0xff]  }
 0x63b   : > { %4486 = vmatprep.subr.bf16.mxu1 %v4799_v7  ;;  %4514 = vmatprep.subr.bf16.mxu0 %v4800_v11  ;;  %v5556_v3 = vpop.f32.mrf.mxu1  ;;  %v5560_v62 = vpop.f32.mrf.mxu0  ;;  %v4809_v7 = vld [vmem:[%s5107_s19 + $0x230] sm:$0xff]   ;;  %v2286_v0 = vmax.f32 %v1977_v46, 0.0 }
 0x63c   : > { %v2275_v10 = vmax.f32 %v2079_v50, 0.0  ;;  %v2277_v11 = vmax.f32 %v2132_v60, 0.0  ;;  %v2288_v12 = vmax.f32 %v2030_v27, 0.0  ;;  %v4826_v46 = vld [vmem:[%s5107_s19 + $0x290] sm:$0xff]   ;;  %v4828_v60 = vld [vmem:[%s5107_s19 + $0x2c8] sm:$0xff]  }
 0x63d   : > { %v5566_v4 = vpop.f32.mrf.mxu1  ;;  %v2334_v13 = vpack.c.bf16 %v2302_v6, %v2286_v0  ;;  %v5568_v14 = vpop.f32.mrf.mxu0 }
 0x63e   : > { %4487 = vmatpush3.bf16.msra.mxu1 %v4801_v5  ;;  %4515 = vmatpush3.bf16.msra.mxu0 %v4802_v53  ;;  %v2261_v5 = vmax.f32 %v2128_v16, 0.0  ;;  %v2336_v53 = vpack.c.bf16 %v2304_v9, %v2288_v12  ;;  %v4829_v16 = vld [vmem:[%s5107_s19 + $0x208] sm:$0xff]  }
 0x63f   : > { %4528 = vmatprep.subr.bf16.mxu1 %v4803_v18  ;;  %4556 = vmatprep.subr.bf16.mxu0 %v4804_v20  ;;  %v2323_v18 = vpack.c.bf16 %v2275_v10, %v2259_v1  ;;  %v5574_v21 = vpop.f32.mrf.mxu1  ;;  %v5576_v22 = vpop.f32.mrf.mxu0  ;;  %v4830_v9 = vld [vmem:[%s5107_s19 + $0x288] sm:$0xff]   ;;  %v4831_v10 = vld [vmem:[%s5107_s19 + $0x240] sm:$0xff]  }
 0x640   : > { %v2325_v20 = vpack.c.bf16 %v2277_v11, %v2261_v5  ;;  %v4835_v5 = vld [vmem:[%s5107_s19 + $0x378] sm:$0xff]  }
 0x641   : > { %3508 = vmatmul.mubr.bf16.vlgmr.msra.gmra.mxu1 %v2318_v31  ;;  %3557 = vmatmul.mubr.bf16.vlgmr.msra.gmra.mxu0 %v2320_v42  ;;  %v4820_v31 = vld [vmem:[%s5107_s19 + $0x2d8] sm:$0xff]   ;;  %v2088_v32 = vpop.f32.mrf.mxu1  ;;  %v2141_v8 = vpop.f32.mrf.mxu0 }
 0x642   : > { %3515 = vmatprep.mubr.bf16.mxu1 %v2335_v45  ;;  %3564 = vmatprep.mubr.bf16.mxu0 %v2337_v59  ;;  %v4822_v42 = vld [vmem:[%s5107_s19 + $0x298] sm:$0xff]   ;;  %v4824_v45 = vld [vmem:[%s5107_s19 + $0x2d0] sm:$0xff]   ;;  %v4827_v59 = vld [vmem:[%s5107_s19 + $0x248] sm:$0xff]   ;;  %v2142_v0 = vadd.f32 %v2141_v8, %v5544_v30 }
 0x643   : > { %4529 = vmatpush3.bf16.msra.mxu1 %v4805_v41  ;;  %4557 = vmatpush3.bf16.msra.mxu0 %v4806_v56  ;;  %v4821_v41 = vld [vmem:[%s5107_s19 + $0x218] sm:$0xff]   ;;  %v5586_v50 = vpop.f32.mrf.mxu1  ;;  %v5588_v56 = vpop.f32.mrf.mxu0 }
 0x644   : > { %4530 = vmatprep.subr.bf16.mxu1 %v4807_v26  ;;  %4558 = vmatprep.subr.bf16.mxu0 %v4808_v35  ;;  %v4825_v26 = vld [vmem:[%s5107_s19 + $0x210] sm:$0xff]   ;;  %v1455_v35 = vrot.slane %v5534_v48, %v5182_v36  ;;  %v2089_v36 = vadd.f32 %v2088_v32, %v5538_v44 }
 0x645   : > { %v2180_v27 = vpop.f32.mrf.mxu1  ;;  %v2233_v6 = vpop.f32.mrf.mxu0 }
 0x646   : > { %v2073_v39 = vadd.f32 %v5498_v57, %v1455_v35  ;;  %v4834_v57 = vld [vmem:[%s5107_s19 + $0x280] sm:$0xff]  }
 0x647   : > { %4531 = vmatpush3.bf16.msra.mxu1 %v4809_v7  ;;  %4559 = vmatpush3.bf16.msra.mxu0 %v4810_v61  ;;  %v2077_v7 = vadd.f32 %v5522_v49, %v1455_v35  ;;  %v2130_v61 = vadd.f32 %v5526_v19, %v1463_v33  ;;  %v5608_v11 = vpop.f32.mrf.mxu1  ;;  %v2126_v49 = vadd.f32 %v5500_v58, %v1463_v33  ;;  %v5613_v12 = vpop.f32.mrf.mxu0  ;;  %v4833_v19 = vld [vmem:[%s5107_s19 + $0x200] sm:$0xff]   ;;  %v4836_v58 = vld [vmem:[%s5107_s19 + $0x3f8] sm:$0xff]  }
 0x648   : > { %4532 = vmatprep.subr.bf16.mxu1 %v4811_v29  ;;  %4560 = vmatprep.subr.bf16.mxu0 %v4812_v40  ;;  %v4832_v29 = vld [vmem:[%s5107_s19 + $0x2c0] sm:$0xff]   ;;  %v2085_v40 = vadd.f32 %v5566_v4, %v5538_v44 }
 0x649   : > { %3516 = vmatmul.mubr.bf16.gmra.mxu1 %v2334_v13  ;;  %3565 = vmatmul.mubr.bf16.gmra.mxu0 %v2336_v53  ;;  %v2274_v1 = vmax.f32 %v2077_v7, 0.0  ;;  %v2138_v13 = vadd.f32 %v5568_v14, %v5544_v30  ;;  %v2307_v53 = vmax.f32 %v2089_v36, 0.0  ;;  %v2184_v44 = vpop.f32.mrf.mxu1  ;;  %v2260_v4 = vmax.f32 %v2126_v49, 0.0  ;;  %v2237_v30 = vpop.f32.mrf.mxu0  ;;  %v4843_v7 = vld [vmem:[%s5107_s19 + $0x368] sm:$0xff]   ;;  %v4847_v49 = vld [vmem:[%s5107_s19 + $0x360] sm:$0xff]  }
 0x64a   : > { %3605 = vmatprep.mubr.bf16.mxu1 %v2323_v18  ;;  %3654 = vmatprep.mubr.bf16.mxu0 %v2325_v20  ;;  %v2258_v18 = vmax.f32 %v2073_v39, 0.0  ;;  %v5624_v20 = vrot.slane %v5534_v48, %v1442_v17  ;;  %v2140_v17 = vadd.f32 %v5576_v22, %v1463_v33  ;;  %v4845_v36 = vld [vmem:[%s5107_s19 + $0x328] sm:$0xff]  }
 0x64b   : > { %4533 = vmatpush3.bf16.msra.mxu1 %v4813_v15  ;;  %4561 = vmatpush3.bf16.msra.mxu0 %v4814_v37  ;;  %v2276_v15 = vmax.f32 %v2130_v61, 0.0  ;;  %v2309_v37 = vmax.f32 %v2142_v0, 0.0  ;;  %v4846_v0 = vld [vmem:[%s5107_s19 + $0x3a8] sm:$0xff]  }
 0x64c   : > { %4534 = vmatprep.subr.bf16.mxu1 %v4815_v51  ;;  %4562 = vmatprep.subr.bf16.mxu0 %v4816_v54  ;;  %v2291_v51 = vmax.f32 %v2085_v40, 0.0  ;;  %v2322_v14 = vpack.c.bf16 %v2274_v1, %v2258_v18  ;;  %v2293_v54 = vmax.f32 %v2138_v13, 0.0  ;;  %v2185_v8 = vadd.f32 %v2184_v44, %v5624_v20  ;;  %v5651_v1 = vpop.f32.mrf.mxu1  ;;  %v5653_v13 = vpop.f32.mrf.mxu0  ;;  %v4854_v44 = vld [vmem:[%s5107_s19 + $0x398] sm:$0xff]  }
 0x64d   : > { %v2181_v22 = vadd.f32 %v2180_v27, %v5624_v20 }
 0x64e   : > { %v2339_v32 = vpack.c.bf16 %v2307_v53, %v2291_v51  ;;  %v4852_v53 = vld [vmem:[%s5107_s19 + $0x3d8] sm:$0xff]   ;;  %v2243_v18 = vpop.f32.mrf.mxu0  ;;  %v4856_v51 = vld [vmem:[%s5107_s19 + $0x3d0] sm:$0xff]  }
 0x64f   : > { %4535 = vmatpush3.bf16.msra.mxu1 %v4817_v24  ;;  %4563 = vmatpush3.bf16.msra.mxu0 %v4818_v25  ;;  %v2087_v24 = vadd.f32 %v5574_v21, %v1455_v35  ;;  %v5630_v25 = vrot.slane %v5534_v48, %v1450_v2  ;;  %v2083_v21 = vadd.f32 %v5556_v3, %v1455_v35  ;;  %v4840_v2 = vld [vmem:[%s5107_s19 + $0x3f0] sm:$0xff]   ;;  %v2279_v35 = vmax.f32 %v2185_v8, 0.0 }
 0x650   : > { %4536 = vmatprep.subr.bf16.mxu1 %v4819_v28  ;;  %4564 = vmatprep.subr.bf16.mxu0 %v4820_v31  ;;  %v4837_v28 = vld [vmem:[%s5107_s19 + $0x338] sm:$0xff]   ;;  %v2324_v31 = vpack.c.bf16 %v2276_v15, %v2260_v4  ;;  %v4841_v3 = vld [vmem:[%s5107_s19 + $0x330] sm:$0xff]   ;;  %v1479_v8 = vrot.slane %v5534_v48, %v1446_v55 }
 0x651   : > { %v4851_v15 = vld [vmem:[%s5107_s19 + $0x358] sm:$0xff]   ;;  %v4855_v4 = vld [vmem:[%s5107_s19 + $0x350] sm:$0xff]  }
 0x653   : > { %4537 = vmatpush3.bf16.msra.mxu1 %v4821_v41  ;;  %4565 = vmatpush3.bf16.msra.mxu0 %v4822_v42  ;;  %v4838_v41 = vld [vmem:[%s5107_s19 + $0x3b8] sm:$0xff]   ;;  %v4839_v42 = vld [vmem:[%s5107_s19 + $0x370] sm:$0xff]  }
 0x654   : > { %4538 = vmatprep.subr.bf16.mxu1 %v4823_v63  ;;  %4566 = vmatprep.subr.bf16.mxu0 %v4824_v45  ;;  %v2341_v63 = vpack.c.bf16 %v2309_v37, %v2293_v54  ;;  %v2238_v45 = vadd.f32 %v2237_v30, %v5630_v25  ;;  %v4853_v37 = vld [vmem:[%s5107_s19 + $0x318] sm:$0xff]   ;;  %v4857_v54 = vld [vmem:[%s5107_s19 + $0x310] sm:$0xff]  }
 0x656   : > { %v2281_v27 = vmax.f32 %v2238_v45, 0.0  ;;  %v4863_v45 = vld [vmem:[%s5107_s19 + $0x340] sm:$0xff]  }
 0x657   : > { %4539 = vmatpush3.bf16.msra.mxu1 %v4825_v26  ;;  %4567 = vmatpush3.bf16.msra.mxu0 %v4826_v46  ;;  %v2136_v26 = vadd.f32 %v5560_v62, %v1463_v33  ;;  %v2306_v46 = vmax.f32 %v2087_v24, 0.0  ;;  %v2290_v62 = vmax.f32 %v2083_v21, 0.0  ;;  %v4844_v33 = vld [vmem:[%s5107_s19 + $0x3e8] sm:$0xff]   ;;  %v4858_v24 = vld [vmem:[%s5107_s19 + $0x390] sm:$0xff]  }
 0x658   : > { %4540 = vmatprep.subr.bf16.mxu1 %v4827_v59  ;;  %4568 = vmatprep.subr.bf16.mxu0 %v4828_v60  ;;  %v2234_v59 = vadd.f32 %v2233_v6, %v5630_v25  ;;  %v2308_v60 = vmax.f32 %v2140_v17, 0.0  ;;  %v1471_v17 = vrot.slane %v5534_v48, %v1438_v52  ;;  %v2232_v48 = vadd.f32 %v5588_v56, %v1479_v8 }
 0x659   : > { %v2338_v6 = vpack.c.bf16 %v2306_v46, %v2290_v62 }
 0x65a   : > { %v2265_v61 = vmax.f32 %v2234_v59, 0.0  ;;  %v2183_v21 = vadd.f32 %v5608_v11, %v1471_v17  ;;  %v2179_v34 = vadd.f32 %v5586_v50, %v1471_v17  ;;  %v4865_v11 = vld [vmem:[%s5107_s19 + $0x300] sm:$0xff]   ;;  %v2244_v59 = vadd.f32 %v2243_v18, %v5630_v25 }
 0x65b   : > { %4541 = vmatpush3.bf16.msra.mxu1 %v4829_v16  ;;  %4569 = vmatpush3.bf16.msra.mxu0 %v4830_v9  ;;  %v4842_v16 = vld [vmem:[%s5107_s19 + $0x3b0] sm:$0xff]   ;;  %v2292_v9 = vmax.f32 %v2136_v26, 0.0  ;;  %v4864_v26 = vld [vmem:[%s5107_s19 + $0x3c0] sm:$0xff]   ;;  %v2264_v50 = vmax.f32 %v2232_v48, 0.0 }
 0x65c   : > { %4542 = vmatprep.subr.bf16.mxu1 %v4831_v10  ;;  %4570 = vmatprep.subr.bf16.mxu0 %v4832_v29  ;;  %v2263_v10 = vmax.f32 %v2181_v22, 0.0  ;;  %v2329_v40 = vpack.c.bf16 %v2281_v27, %v2265_v61  ;;  %v2278_v46 = vmax.f32 %v2183_v21, 0.0  ;;  %v2297_v56 = vmax.f32 %v2244_v59, 0.0 }
 0x65d   : > { %v2340_v29 = vpack.c.bf16 %v2308_v60, %v2292_v9 }
 0x65e   : > { %v2327_v39 = vpack.c.bf16 %v2279_v35, %v2263_v10  ;;  %v2262_v35 = vmax.f32 %v2179_v34, 0.0 }
 0x65f   : > { %4543 = vmatpush3.bf16.msra.mxu1 %v4833_v19  ;;  %4571 = vmatpush3.bf16.msra.mxu0 %v4834_v57  ;;  %v4848_v19 = vld [vmem:[%s5107_s19 + $0x3e0] sm:$0xff]  }
 0x660   : > { %4584 = vmatprep.subr.bf16.mxu1 %v4835_v5  ;;  %4612 = vmatprep.subr.bf16.mxu0 %v4836_v58  ;;  %v4849_v57 = vld [vmem:[%s5107_s19 + $0x320] sm:$0xff]   ;;  %v2190_v58 = vpop.f32.mrf.mxu1  ;;  %v2326_v62 = vpack.c.bf16 %v2278_v46, %v2262_v35 }
 0x661   : > { %v4850_v5 = vld [vmem:[%s5107_s19 + $0x3a0] sm:$0xff]   ;;  %v2191_v22 = vadd.f32 %v2190_v58, %v5624_v20 }
 0x662   : > { %3606 = vmatmul.mubr.bf16.vlgmr.msra.gmra.mxu1 %v2322_v14  ;;  %3655 = vmatmul.mubr.bf16.vlgmr.msra.gmra.mxu0 %v2324_v31  ;;  %v2192_v30 = vpop.f32.mrf.mxu1  ;;  %v2245_v14 = vpop.f32.mrf.mxu0  ;;  %v4860_v31 = vld [vmem:[%s5107_s19 + $0x3c8] sm:$0xff]   ;;  %v4251_v35 = vld [vmem:[%s733_s21] ss:$0 sm:$0xff] }
 0x663   : > { %3613 = vmatprep.mubr.bf16.mxu1 %v2339_v32  ;;  %3662 = vmatprep.mubr.bf16.mxu0 %v2341_v63  ;;  %v4862_v63 = vld [vmem:[%s5107_s19 + $0x388] sm:$0xff]   ;;  %v2193_v27 = vadd.f32 %v2192_v30, %v1471_v17 }
 0x664   : > { %4585 = vmatpush3.bf16.msra.mxu1 %v4837_v28  ;;  %4613 = vmatpush3.bf16.msra.mxu0 %v4838_v41  ;;  %v4859_v28 = vld [vmem:[%s5107_s19 + $0x348] sm:$0xff]   ;;  %v2194_v32 = vpop.f32.mrf.mxu1  ;;  %v2247_v41 = vpop.f32.mrf.mxu0 }
 0x665   : > { %4586 = vmatprep.subr.bf16.mxu1 %v4839_v42  ;;  %4614 = vmatprep.subr.bf16.mxu0 %v4840_v2  ;;  %v4861_v42 = vld [vmem:[%s5107_s19 + $0x308] sm:$0xff]   ;;  %v2236_v2 = vadd.f32 %v5613_v12, %v1479_v8  ;;  %v2195_v52 = vadd.f32 %v2194_v32, %v5624_v20  ;;  %v2248_v55 = vadd.f32 %v2247_v41, %v5630_v25  ;;  %v4866_v12 = vld [vmem:[%s5107_s19 + $0x380] sm:$0xff]   ;;  %v2310_v61 = vmax.f32 %v2193_v27, 0.0 }
 0x666   : > { %v2189_v25 = vadd.f32 %v5651_v1, %v1471_v17 }
 0x667   : > { %v2311_v60 = vmax.f32 %v2195_v52, 0.0 }
 0x668   : > { %4587 = vmatpush3.bf16.msra.mxu1 %v4841_v3  ;;  %4615 = vmatpush3.bf16.msra.mxu0 %v4842_v16  ;;  %v2280_v3 = vmax.f32 %v2236_v2, 0.0  ;;  %v2313_v16 = vmax.f32 %v2248_v55, 0.0 }
 0x669   : > { %4588 = vmatprep.subr.bf16.mxu1 %v4843_v7  ;;  %4616 = vmatprep.subr.bf16.mxu0 %v4844_v33  ;;  %v2295_v7 = vmax.f32 %v2191_v22, 0.0  ;;  %v2246_v33 = vadd.f32 %v2245_v14, %v1479_v8 }
 0x66a   : > { %3614 = vmatmul.mubr.bf16.gmra.mxu1 %v2338_v6  ;;  %3663 = vmatmul.mubr.bf16.gmra.mxu0 %v2340_v29  ;;  %v2328_v20 = vpack.c.bf16 %v2280_v3, %v2264_v50  ;;  %v2345_v10 = vpack.c.bf16 %v2313_v16, %v2297_v56  ;;  %v2242_v6 = vadd.f32 %v5653_v13, %v1479_v8  ;;  %v2294_v29 = vmax.f32 %v2189_v25, 0.0 }
 0x66b   : > { %3703 = vmatprep.mubr.bf16.mxu1 %v2327_v39  ;;  %3752 = vmatprep.mubr.bf16.mxu0 %v2329_v40  ;;  %v2343_v9 = vpack.c.bf16 %v2311_v60, %v2295_v7 }
 0x66c   : > { %4589 = vmatpush3.bf16.msra.mxu1 %v4845_v36  ;;  %4617 = vmatpush3.bf16.msra.mxu0 %v4846_v0  ;;  %v2312_v36 = vmax.f32 %v2246_v33, 0.0  ;;  %v2296_v39 = vmax.f32 %v2242_v6, 0.0  ;;  %v2342_v0 = vpack.c.bf16 %v2310_v61, %v2294_v29 }
 0x66d   : > { %4590 = vmatprep.subr.bf16.mxu1 %v4847_v49  ;;  %4618 = vmatprep.subr.bf16.mxu0 %v4848_v19 }
 0x66e   : > { %v2344_v49 = vpack.c.bf16 %v2312_v36, %v2296_v39 }
 0x670   : > { %4591 = vmatpush3.bf16.msra.mxu1 %v4849_v57  ;;  %4619 = vmatpush3.bf16.msra.mxu0 %v4850_v5 }
 0x671   : > { %4592 = vmatprep.subr.bf16.mxu1 %v4851_v15  ;;  %4620 = vmatprep.subr.bf16.mxu0 %v4852_v53 }
 0x674   : > { %4593 = vmatpush3.bf16.msra.mxu1 %v4853_v37  ;;  %4621 = vmatpush3.bf16.msra.mxu0 %v4854_v44 }
 0x675   : > { %4594 = vmatprep.subr.bf16.mxu1 %v4855_v4  ;;  %4622 = vmatprep.subr.bf16.mxu0 %v4856_v51 }
 0x678   : > { %4595 = vmatpush3.bf16.msra.mxu1 %v4857_v54  ;;  %4623 = vmatpush3.bf16.msra.mxu0 %v4858_v24 }
 0x679   : > { %4596 = vmatprep.subr.bf16.mxu1 %v4859_v28  ;;  %4624 = vmatprep.subr.bf16.mxu0 %v4860_v31 }
 0x67c   : > { %4597 = vmatpush3.bf16.msra.mxu1 %v4861_v42  ;;  %4625 = vmatpush3.bf16.msra.mxu0 %v4862_v63 }
 0x67d   : > { %4598 = vmatprep.subr.bf16.mxu1 %v4863_v45  ;;  %4626 = vmatprep.subr.bf16.mxu0 %v4864_v26 }
 0x680   : > { %4599 = vmatpush3.bf16.msra.mxu1 %v4865_v11  ;;  %4627 = vmatpush3.bf16.msra.mxu0 %v4866_v12 }
 0x683   : > { %3704 = vmatmul.mubr.bf16.vlgmr.msra.gmra.mxu1 %v2326_v62  ;;  %3753 = vmatmul.mubr.bf16.vlgmr.msra.gmra.mxu0 %v2328_v20 }
 0x684   : > { %3711 = vmatprep.mubr.bf16.mxu1 %v2343_v9  ;;  %3760 = vmatprep.mubr.bf16.mxu0 %v2345_v10 }
 0x68b   : > { %3712 = vmatmul.mubr.bf16.gmra.mxu1 %v2342_v0  ;;  %3761 = vmatmul.mubr.bf16.gmra.mxu0 %v2344_v49 }
 0x6e1   : > { %v4432_v40 = vpop.f32.mrf.mxu1  ;;  %v4460_v19 = vpop.f32.mrf.mxu0 }
 0x6e3   : > { %v4433_v57 = vpop.f32.mrf.mxu1  ;;  %v4461_v5 = vpop.f32.mrf.mxu0 }
 0x6e4   : > { %v4434_v3 = vadd.f32 %v4433_v57, %v4432_v40  ;;  %v4462_v56 = vadd.f32 %v4461_v5, %v4460_v19 }
 0x6e5   : > { %v4435_v1 = vpop.f32.mrf.mxu1  ;;  %v4463_v15 = vpop.f32.mrf.mxu0 }
 0x6e6   : > { %v3412_v50 = vadd.f32 %v4434_v3, %v4251_v35 }
 0x6e7   : > { %v4436_v53 = vpop.f32.mrf.mxu1  ;;  %v4464_v58 = vpop.f32.mrf.mxu0 }
 0x6e8   : > { %v4437_v7 = vadd.f32 %v4436_v53, %v4435_v1  ;;  %v3461_v9 = vadd.f32 %v4462_v56, %v3412_v50  ;;  %v4465_v6 = vadd.f32 %v4464_v58, %v4463_v15 }
 0x6e9   : > { %v4438_v13 = vpop.f32.mrf.mxu1  ;;  %v4466_v18 = vpop.f32.mrf.mxu0 }
 0x6ea   : > { %v3415_v25 = vadd.f32 %v4437_v7, %v4251_v35 }
 0x6eb   : > { %v4439_v37 = vpop.f32.mrf.mxu1  ;;  %v4467_v44 = vpop.f32.mrf.mxu0 }
 0x6ec   : > { %v4440_v20 = vadd.f32 %v4439_v37, %v4438_v13  ;;  %v3464_v0 = vadd.f32 %v4465_v6, %v3415_v25  ;;  %v4468_v3 = vadd.f32 %v4467_v44, %v4466_v18 }
 0x6ed   : > { %v4441_v4 = vpop.f32.mrf.mxu1  ;;  %v5689_v51 = vpop.f32.mrf.mxu0 }
 0x6ee   : > { %v3420_v29 = vadd.f32 %v4440_v20, %v4251_v35 }
 0x6ef   : > { %v4442_v30 = vpop.f32.mrf.mxu1  ;;  %v4470_v14 = vpop.f32.mrf.mxu0 }
 0x6f0   : > { %v4443_v49 = vadd.f32 %v4442_v30, %v4441_v4  ;;  %v3469_v5 = vadd.f32 %v4468_v3, %v3420_v29 }
 0x6f2   : > { %v3423_v37 = vadd.f32 %v4443_v49, %v4251_v35 }
 0x701   : > { %v4488_v54 = vpop.f32.mrf.mxu1  ;;  %v4516_v24 = vpop.f32.mrf.mxu0 }
 0x703   : > { %v4489_v28 = vpop.f32.mrf.mxu1  ;;  %v4517_v31 = vpop.f32.mrf.mxu0 }
 0x704   : > { %v4490_v27 = vadd.f32 %v4489_v28, %v4488_v54  ;;  %v4518_v40 = vadd.f32 %v4517_v31, %v4516_v24 }
 0x705   : > { %v4491_v17 = vpop.f32.mrf.mxu1  ;;  %v4519_v32 = vpop.f32.mrf.mxu0 }
 0x706   : > { %v3510_v61 = vadd.f32 %v4490_v27, %v3461_v9 }
 0x707   : > { %v4492_v8 = vpop.f32.mrf.mxu1  ;;  %v4520_v41 = vpop.f32.mrf.mxu0 }
 0x708   : > { %v4493_v36 = vadd.f32 %v4492_v8, %v4491_v17  ;;  %v3559_v53 = vadd.f32 %v4518_v40, %v3510_v61  ;;  %v4521_v54 = vadd.f32 %v4520_v41, %v4519_v32  ;;  %v4471_v8 = vadd.f32 %v4470_v14, %v5689_v51 }
 0x709   : > { %v4494_v42 = vpop.f32.mrf.mxu1  ;;  %v4522_v21 = vpop.f32.mrf.mxu0 }
 0x70a   : > { %v3513_v19 = vadd.f32 %v4493_v36, %v3464_v0 }
 0x70b   : > { %v4495_v63 = vpop.f32.mrf.mxu1  ;;  %v4523_v45 = vpop.f32.mrf.mxu0 }
 0x70c   : > { %v4496_v1 = vadd.f32 %v4495_v63, %v4494_v42  ;;  %v3562_v7 = vadd.f32 %v4521_v54, %v3513_v19  ;;  %v4524_v31 = vadd.f32 %v4523_v45, %v4522_v21  ;;  %v3472_v42 = vadd.f32 %v4471_v8, %v3423_v37 }
 0x70d   : > { %v4497_v2 = vpop.f32.mrf.mxu1  ;;  %v5691_v52 = vpop.f32.mrf.mxu0 }
 0x70e   : > { %v3518_v58 = vadd.f32 %v4496_v1, %v3469_v5 }
 0x70f   : > { %v4498_v26 = vpop.f32.mrf.mxu1  ;;  %v5693_v34 = vpop.f32.mrf.mxu0 }
 0x710   : > { %v4499_v4 = vadd.f32 %v4498_v26, %v4497_v2  ;;  %v3567_v32 = vadd.f32 %v4524_v31, %v3518_v58  ;;  %v4527_v51 = vadd.f32 %v5693_v34, %v5691_v52 }
 0x722   : > { %v4544_v55 = vpop.f32.mrf.mxu1  ;;  %v4572_v48 = vpop.f32.mrf.mxu0 }
 0x724   : > { %v4545_v22 = vpop.f32.mrf.mxu1  ;;  %v4573_v11 = vpop.f32.mrf.mxu0 }
 0x725   : > { %v4546_v57 = vadd.f32 %v4545_v22, %v4544_v55  ;;  %v4574_v30 = vadd.f32 %v4573_v11, %v4572_v48 }
 0x726   : > { %v4547_v46 = vpop.f32.mrf.mxu1  ;;  %v4575_v59 = vpop.f32.mrf.mxu0 }
 0x727   : > { %v3608_v28 = vadd.f32 %v4546_v57, %v3559_v53 }
 0x728   : > { %v4548_v12 = vpop.f32.mrf.mxu1  ;;  %v4576_v60 = vpop.f32.mrf.mxu0 }
 0x729   : > { %v4549_v50 = vadd.f32 %v4548_v12, %v4547_v46  ;;  %v3657_v63 = vadd.f32 %v4574_v30, %v3608_v28  ;;  %v3521_v46 = vadd.f32 %v4499_v4, %v3472_v42  ;;  %v4577_v12 = vadd.f32 %v4576_v60, %v4575_v59 }
 0x72a   : > { %v4550_v16 = vpop.f32.mrf.mxu1  ;;  %v4578_v62 = vpop.f32.mrf.mxu0 }
 0x72b   : > { %v3611_v55 = vadd.f32 %v4549_v50, %v3562_v7  ;;  %v3570_v9 = vadd.f32 %v4527_v51, %v3521_v46 }
 0x72c   : > { %v4551_v33 = vpop.f32.mrf.mxu1  ;;  %v4579_v10 = vpop.f32.mrf.mxu0 }
 0x72d   : > { %v4552_v18 = vadd.f32 %v4551_v33, %v4550_v16  ;;  %v3660_v21 = vadd.f32 %v4577_v12, %v3611_v55  ;;  %v4580_v16 = vadd.f32 %v4579_v10, %v4578_v62 }
 0x72e   : > { %v4553_v39 = vpop.f32.mrf.mxu1  ;;  %v4581_v38 = vpop.f32.mrf.mxu0 }
 0x72f   : > { %v3616_v14 = vadd.f32 %v4552_v18, %v3567_v32 }
 0x730   : > { %v4554_v13 = vpop.f32.mrf.mxu1  ;;  %v4582_v15 = vpop.f32.mrf.mxu0 }
 0x731   : > { %v4555_v45 = vadd.f32 %v4554_v13, %v4553_v39  ;;  %v3665_v60 = vadd.f32 %v4580_v16, %v3616_v14  ;;  %v4583_v40 = vadd.f32 %v4582_v15, %v4581_v38  ;;  %v5814_v15 = vld [vmem:[#allocation8_spill] sm:$0xff] }
 0x733   : > { %v3619_v29 = vadd.f32 %v4555_v45, %v3570_v9 }
 0x735   : > { %v3668_v53 = vadd.f32 %v4583_v40, %v3619_v29 }
 0x743   : > { %v4600_v17 = vpop.f32.mrf.mxu1  ;;  %v4628_v24 = vpop.f32.mrf.mxu0 }
 0x745   : > { %v4601_v44 = vpop.f32.mrf.mxu1  ;;  %v4629_v35 = vpop.f32.mrf.mxu0 }
 0x746   : > { %v4602_v22 = vadd.f32 %v4601_v44, %v4600_v17  ;;  %v4630_v27 = vadd.f32 %v4629_v35, %v4628_v24 }
 0x747   : > { %v4603_v41 = vpop.f32.mrf.mxu1  ;;  %v4631_v20 = vpop.f32.mrf.mxu0 }
 0x748   : > { %v3706_v56 = vadd.f32 %v4602_v22, %v3657_v63 }
 0x749   : > { %v4604_v2 = vpop.f32.mrf.mxu1  ;;  %v4632_v11 = vpop.f32.mrf.mxu0 }
 0x74a   : > { %v3755_v26 = vadd.f32 %v4630_v27, %v3706_v56  ;;  %v4605_v48 = vadd.f32 %v4604_v2, %v4603_v41  ;;  %v4633_v6 = vadd.f32 %v4632_v11, %v4631_v20 }
 0x74b   : > { %v4606_v33 = vpop.f32.mrf.mxu1  ;;  %v4634_v61 = vpop.f32.mrf.mxu0 }
 0x74c   : > { %v3709_v25 = vadd.f32 %v4605_v48, %v3660_v21  ;;  %v3769_v59 = vadd.f32 %v3755_v26, %v5291_v23 }
 0x74d   : > { %v4607_v36 = vpop.f32.mrf.mxu1  ;;  %v4635_v34 = vpop.f32.mrf.mxu0 }
 0x74e   : > { %v3758_v0 = vadd.f32 %v4633_v6, %v3709_v25  ;;  %v4608_v52 = vadd.f32 %v4607_v36, %v4606_v33  ;;  %v3775_v49 = vsel %vm914_vm2, %v3769_v59, 0.0  ;;  %v4636_v62 = vadd.f32 %v4635_v34, %v4634_v61  ;;  %v4380_v25 = vld [vmem:[%s736_s0] ss:$0 sm:$0xff] }
 0x74f   : > { %v4609_v39 = vpop.f32.mrf.mxu1  ;;  %3776 = vadd.xlane.f32.xlu1 %v3775_v49  ;;  %v4637_v10 = vpop.f32.mrf.mxu0  ;;  %v4381_v61 = vld [vmem:[%s739_s26] ss:$0 sm:$0xff]  ;;  %s5815_s26 = sld [smem:[#allocation12_spill]] (!%p4382_p5) }
 0x750   : > { %v3714_v57 = vadd.f32 %v4608_v52, %v3665_v60  ;;  %v3770_v3 = vadd.f32 %v3758_v0, %v5294_v43 }
 0x751   : > { %v4610_v1 = vpop.f32.mrf.mxu1  ;;  %v4638_v5 = vpop.f32.mrf.mxu0 }
 0x752   : > { %v3763_v19 = vadd.f32 %v4636_v62, %v3714_v57  ;;  %v4611_v23 = vadd.f32 %v4610_v1, %v4609_v39  ;;  %v3778_v13 = vsel %vm914_vm2, %v3770_v3, 0.0  ;;  %v4639_v54 = vadd.f32 %v4638_v5, %v4637_v10 }
 0x753   : > { %3779 = vadd.xlane.f32.xlu0 %v3778_v13 }
 0x754   : > { %v3717_v37 = vadd.f32 %v4611_v23, %v3668_v53  ;;  %v3771_v28 = vadd.f32 %v3763_v19, %v5316_v47 }
 0x756   : > { %v3766_v50 = vadd.f32 %v4639_v54, %v3717_v37  ;;  %v3781_v38 = vsel %vm914_vm2, %v3771_v28, 0.0 }
 0x757   : > { %3782 = vadd.xlane.f32.xlu1 %v3781_v38 }
 0x758   : > { %v3772_v58 = vadd.f32 %v3766_v50, %v5814_v15 }
 0x75a   : > { %v3784_v43 = vsel %vm914_vm2, %v3772_v58, 0.0 }
 0x75b   : > { %3785 = vadd.xlane.f32.xlu0 %v3784_v43 }
 0x7d8   : > { %v3777_v17 = vpop.xlane.xlu1 %3776 }
 0x7d9   : > { %v3787_v8 = vmul.f32 0.015625, %v3777_v17 }
 0x7db   : > { %v3791_v7 = vsub.f32 %v3769_v59, %v3787_v8 }
 0x7dc   : > { %v3780_v4 = vpop.xlane.xlu0 %3779 }
 0x7dd   : > { %v3788_v30 = vmul.f32 0.015625, %v3780_v4  ;;  %v3795_v24 = vmul.f32 %v3791_v7, %v3791_v7 }
 0x7df   : > { %v3792_v31 = vsub.f32 %v3770_v3, %v3788_v30  ;;  %v3799_v18 = vsel %vm914_vm2, %v3795_v24, 0.0 }
 0x7e0   : > { %3800 = vadd.xlane.f32.xlu1 %v3799_v18  ;;  %v3783_v47 = vpop.xlane.xlu1 %3782 }
 0x7e1   : > { %v3789_v44 = vmul.f32 0.015625, %v3783_v47  ;;  %v3796_v42 = vmul.f32 %v3792_v31, %v3792_v31 }
 0x7e3   : > { %v3793_v63 = vsub.f32 %v3771_v28, %v3789_v44  ;;  %v3802_v55 = vsel %vm914_vm2, %v3796_v42, 0.0 }
 0x7e4   : > { %3803 = vadd.xlane.f32.xlu0 %v3802_v55  ;;  %v3786_v22 = vpop.xlane.xlu0 %3785 }
 0x7e5   : > { %v3790_v35 = vmul.f32 0.015625, %v3786_v22  ;;  %v3797_v32 = vmul.f32 %v3793_v63, %v3793_v63 }
 0x7e7   : > { %v3794_v41 = vsub.f32 %v3772_v58, %v3790_v35  ;;  %v3805_v46 = vsel %vm914_vm2, %v3797_v32, 0.0 }
 0x7e8   : > { %3806 = vadd.xlane.f32.xlu1 %v3805_v46 }
 0x7e9   : > { %v3798_v12 = vmul.f32 %v3794_v41, %v3794_v41 }
 0x7eb   : > { %v3808_v56 = vsel %vm914_vm2, %v3798_v12, 0.0 }
 0x7ec   : > { %3809 = vadd.xlane.f32.xlu0 %v3808_v56 }
 0x869   : > { %v3801_v27 = vpop.xlane.xlu1 %3800 }
 0x86a   : > { %v3811_v20 = vmul.f32 0.015625, %v3801_v27 }
 0x86c   : > { %v3815_v51 = vadd.f32 1e-05, %v3811_v20 }
 0x86d   : > { %v3804_v14 = vpop.xlane.xlu0 %3803 }
 0x86e   : > { %4899 = vrsqrt.f32 %v3815_v51  ;;  %v3812_v2 = vmul.f32 0.015625, %v3804_v14 }
 0x870   : > { %v3816_v21 = vadd.f32 1e-05, %v3812_v2 }
 0x871   : > { %v3807_v45 = vpop.xlane.xlu1 %3806 }
 0x872   : > { %4901 = vrsqrt.f32 %v3816_v21  ;;  %v3813_v26 = vmul.f32 0.015625, %v3807_v45 }
 0x874   : > { %v3817_v48 = vadd.f32 1e-05, %v3813_v26 }
 0x875   : > { %v3810_v11 = vpop.xlane.xlu0 %3809 }
 0x876   : > { %4903 = vrsqrt.f32 %v3817_v48  ;;  %v3814_v16 = vmul.f32 0.015625, %v3810_v11 }
 0x878   : > { %v3818_v33 = vadd.f32 1e-05, %v3814_v16 }
 0x87a   : > { %4905 = vrsqrt.f32 %v3818_v33 }
 0x87b   : > { %v4900_v9 = vpop.eup %4899 }
 0x87c   : > { %v3823_v6 = vmul.f32 %v4900_v9, %v3791_v7 }
 0x87e   : > { %v3833_v59 = vmul.f32 %v4380_v25, %v3823_v6 }
 0x87f   : > { %v4902_v60 = vpop.eup %4901 }
 0x880   : > { %v3843_v36 = vadd.f32 %v4381_v61, %v3833_v59  ;;  %v3824_v29 = vmul.f32 %v4902_v60, %v3792_v31 }
 0x882   : > { %3847 = vst.msk [vmem:[#allocation2] sm:$0xff] %vm914_vm2, %v3843_v36  ;;  %v3834_v0 = vmul.f32 %v4380_v25, %v3824_v29 }
 0x883   : > { %v4904_v52 = vpop.eup %4903 }
 0x884   : > { %v3844_v34 = vadd.f32 %v4381_v61, %v3834_v0  ;;  %v3825_v49 = vmul.f32 %v4904_v52, %v3793_v63 }
 0x886   : > { %3848 = vst.msk [vmem:[#allocation2 + $0x8] sm:$0xff] %vm914_vm2, %v3844_v34  ;;  %v3835_v39 = vmul.f32 %v4380_v25, %v3825_v49 }
 0x887   : > { %v4906_v40 = vpop.eup %4905 }
 0x888   : > { %v3845_v57 = vadd.f32 %v4381_v61, %v3835_v39  ;;  %v3826_v62 = vmul.f32 %v4906_v40, %v3794_v41 }
 0x88a   : > { %3849 = vst.msk [vmem:[#allocation2 + $0x10] sm:$0xff] %vm914_vm2, %v3845_v57  ;;  %v3836_v10 = vmul.f32 %v4380_v25, %v3826_v62  ;;  %3854 = sbr.rel (%p4382_p5) target bundleno = 2411 (0x96b), region = 100 }
 0x88c   : > { %v3846_v3 = vadd.f32 %v4381_v61, %v3836_v10 }
 0x88e   : > { %3850 = vst.msk [vmem:[#allocation2 + $0x18] sm:$0xff] %vm914_vm2, %v3846_v3 }
 0x88f   : > { %v4907_v1 = vld [vmem:[%s5815_s26 + $0x18] sm:$0xff]   ;;  %v4949_v53 = vmov 0.0   ;;  %v4908_v19 = vld [vmem:[%s5815_s26 + $0x10] sm:$0xff]   ;;  %vm4950_vm3 = vmmov 0   ;;  %v3855_v23 = vsel %vm914_vm2, %v3843_v36, 0.0  ;;  %v3856_v5 = vsel %vm914_vm2, %v3844_v34, 0.0 }
 0x890   : > { %4683 = vmatprep.subr.bf16.mxu0 %v4949_v53  ;;  %4691 = vmatprep.mubr.msk.bf16.mxu0 %vm4950_vm3, %v4949_v53  ;;  %v3857_v13 = vadd.f32 %v3856_v5, %v3855_v23  ;;  %v3866_v37 = vsel %vm914_vm2, %v3845_v57, 0.0  ;;  %v3867_v54 = vsel %vm914_vm2, %v3846_v3, 0.0  ;;  %v4909_v50 = vld [vmem:[%s5815_s26 + $0x8] sm:$0xff]   ;;  %v4910_v17 = vld [vmem:[%s5815_s26] sm:$0xff]   ;;  %vm3876_vm4 = vcmask 1040384  }
 0x891   : > { %4684 = vmatpush3.bf16.msra.mxu0 %v4907_v1  ;;  %v3868_v28 = vadd.f32 %v3867_v54, %v3866_v37  ;;  %v4383_v22 = vld [vmem:[%s5816_s2] ss:$0 sm:$0xff] }
 0x892   : > { %4685 = vmatprep.subr.bf16.mxu0 %v4949_v53  ;;  %v3858_v38 = vrot.slane %v3857_v13, 4 }
 0x893   : > { %v3869_v15 = vrot.slane %v3868_v28, 4 }
 0x894   : > { %v3859_v58 = vadd.f32 %v3858_v38, %v3857_v13 }
 0x895   : > { %4686 = vmatpush3.bf16.msra.mxu0 %v4908_v19  ;;  %v3870_v43 = vadd.f32 %v3869_v15, %v3868_v28 }
 0x896   : > { %4687 = vmatprep.subr.bf16.mxu0 %v4949_v53  ;;  %v3860_v8 = vrot.slane %v3859_v58, 2 }
 0x897   : > { %v3871_v7 = vrot.slane %v3870_v43, 2 }
 0x898   : > { %v3861_v4 = vadd.f32 %v3860_v8, %v3859_v58 }
 0x899   : > { %4688 = vmatpush3.bf16.msra.mxu0 %v4909_v50  ;;  %v3872_v30 = vadd.f32 %v3871_v7, %v3870_v43 }
 0x89a   : > { %4689 = vmatprep.subr.bf16.mxu0 %v4949_v53  ;;  %v3862_v24 = vrot.slane %v3861_v4, 1 }
 0x89b   : > { %v3873_v31 = vrot.slane %v3872_v30, 1 }
 0x89c   : > { %v3863_v18 = vadd.f32 %v3862_v24, %v3861_v4 }
 0x89d   : > { %4690 = vmatpush3.bf16.msra.mxu0 %v4910_v17  ;;  %v3874_v47 = vadd.f32 %v3873_v31, %v3872_v30 }
 0x89e   : > { %v3865_v44 = vmul.f32 0.0625, %v3863_v18 }
 0x89f   : > { %v3875_v42 = vmul.f32 0.0625, %v3874_v47 }
 0x8a1   : > { %v3877_v63 = vsel %vm3876_vm4, %v3865_v44, %v3875_v42 }
 0x8a2   : > { %v3878_v55 = vpack.c.bf16 %v3877_v63, %v3877_v63 }
 0x8a4   : > { %4692 = vmatmul.mubr.msk.bf16.vlgmr.msra.gmra.mxu0 %vm914_vm2, %v3878_v55 }
 0x964   : > { %v3955_v35 = vpop.f32.mrf.mxu0 }
 0x965   : > { %v3956_v32 = vadd.f32 %v4383_v22, %v3955_v35 }
 0x966   : > { %v4693_v41 = vpop.f32.mrf.mxu0 }
 0x967   : > { %3961 = vst [vmem:[#allocation3] sm:$0x3] %v3956_v32 }
 0x968   : > { %v3958_v46 = vpop.f32.mrf.mxu0 }
 0x96a   : > { %v4694_v12 = vpop.f32.mrf.mxu0 }
 0x96b PF: > { %p4699_p6 = scmp.eq.s32.totalorder %s5053_s28, 2  ;;  %s4951_s18 = smov [#allocation3]  }
 0x96c   : > { %s3969_s21 = sshll.u32 %s4951_s18, 4  ;;  %s3970_s21 = int_to_ptr.vmem [resolvable:$true] %s3969_s21 }
 0x96d   : > { %s4911_s19 = scalar_lea.vmem %s3970_s21, 32  ;;  %p4918_p10 = scmp.lt.s32.totalorder %s3970_s21, %s3970_s21 }
 0x96e   : > { %p4912_p7 = scmp.ne.s32.totalorder %s3970_s21, %s4911_s19  ;;  %p4919_p11 = scmp.lt.s32.totalorder %s4911_s19, %s4911_s19 }
 0x970   : > { %p4913_p8 = pnand %p4912_p7, %p4699_p6  ;;  %p4920_p12 = por %p4919_p11, %p4918_p10 }
 0x972   : > { %p4914_p9 = pneg %p4913_p8 }
 0x974   : > { %p4921_p13 = pnand %p4920_p12, %p4914_p9 }
 0x976   : > { %4924 = shalt.err (!%p4921_p13)
}
 0x977   : > { %s5817_s29 = sld [smem:[#allocation17_spill]] }
 0x97d   : > { %4696 = dma.vmem_to_hbm [thread:$0]  (%p4699_p6), %s3970_s21, 32, %s5817_s29, [#allocation4]  }
 0x97e   : > { %4940 = dma.done.wait (%p4699_p6), [#allocation4], 32  }
 0x97f   : > { %4942 = vsyncadd (%p4699_p6), [#allocation4], 4294967264 }
 0x980 PF: > { %s5818_s0 = sld [smem:[#allocation6_spill]] }
 0x986   : > { %s29_s27 = sadd.s32 1, %s5818_s0  }
 0x987   : > { %p26_p0 = scmp.ge.s32.totalorder %s29_s27, 5  }
 0x989   :  { %28 = sbr.rel (!%p26_p0) target bundleno = 11 (0xb), region = 160 }
 0x98e   :  { %3982 = vsyncpa [#allocation4], 1 }
 0x98f   :  { %3984 = vsyncpa [#allocation4 + $0x1], 1 }

</bundles_post_ra>
